<compile_context>
chip_gen: v7x
topology: tpu7x:2x2x1
jax: 0.10.0
libtpu: 0.0.40
codegen_flags: <defaults>
</compile_context>

<pallas_src>
import jax
import jax.numpy as jnp
from jax.experimental import pallas as pl
from jax.experimental.pallas import tpu as pltpu


def _sigmoid(z):
    # Exact sigmoid (exp on EUP + divide).  pl.reciprocal(..., approx=True)
    # would move the divide to the EUP approx path, but costs ~2^-12 accuracy.
    return 1.0 / (1.0 + jnp.exp(-z))


# -----------------------------------------------------------------------------
# Fused kernel:
#   in-VMEM im2col -> one (10N, taps*cin) x (taps*cin, HW) MXU matmul ->
#   all gate math (outer MIM cell + inner MIMS ConvLSTM) ->
#   fused 1x1 conv_last -> o * tanh(.) epilogue -> one packed (4N, HW) store.
# Pre-activation row groups produced by the fused conv weight:
#   0: i_x+i_t   1: i_x+i_s   2: g_x+g_t   3: g_x+g_s   4: f_x+f_s
#   5: o_x+o_t+o_s   6: i_h+i_xm   7: f_h+f_xm   8: g_h+g_xm   9: o_h+o_xm
# -----------------------------------------------------------------------------
def _make_fused_kernel(H, W, N, C, fs):
    HW = H * W
    pad = fs // 2
    taps = fs * fs
    cin = C + 4 * N

    def kernel(h_ref, m_ref, x_ref, c_ref, dh_ref, cl_ref,
               wconv_ref, ctw_ref, ocw_ref, wlast_ref,
               out_ref, patch_ref):
        # ---- concat the 5 inputs along channels (sublane axis), all f32 -----
        xcat = jnp.concatenate(
            [h_ref[0], m_ref[0], x_ref[0], c_ref[0], dh_ref[0]], axis=0)  # (cin, HW)

        # column index of every flattened spatial position (W-boundary mask)
        col = jax.lax.broadcasted_iota(jnp.int32, (1, HW), 1) % W

        # ---- in-VMEM im2col: patch[k*cin + ch, p] = in[ch, (y+dy, x+dx)] ----
        for k in range(taps):
            dy, dx = k // fs - pad, k % fs - pad
            s = dy * W + dx          # flat shift:  out[p] = in[p + s] (0 if OOB)
            if s == 0:
                shifted = xcat
            elif s > 0:
                shifted = jnp.concatenate(
                    [xcat[:, s:], jnp.zeros((cin, s), xcat.dtype)], axis=1)
            else:
                shifted = jnp.concatenate(
                    [jnp.zeros((cin, -s), xcat.dtype), xcat[:, :HW + s]], axis=1)
            if dx != 0:              # mask columns whose x+dx falls off the row
                valid = jnp.logical_and(col + dx >= 0, col + dx < W)
                shifted = jnp.where(valid, shifted, 0.0)
            patch_ref[k * cin:(k + 1) * cin, :] = shifted

        # ---- single MXU pass: (10N, taps*cin) @ (taps*cin, HW) --------------
        w = wconv_ref[...]
        pre = jnp.dot(w, patch_ref[...].astype(w.dtype),
                      preferred_element_type=jnp.float32)         # (10N, HW) f32

        def gate(idx):
            return pre[idx * N:(idx + 1) * N, :]

        m_prev = m_ref[0]
        c_t = cl_ref[0]                  # inner ConvLSTM cell state
        ctw = ctw_ref[...]
        ocw = ocw_ref[...]

        # ---- outer MIM cell --------------------------------------------------
        i = _sigmoid(gate(0))
        g = jnp.tanh(gate(2))
        o = _sigmoid(gate(5))
        m_next = (_sigmoid(gate(4) + 1.0) * m_prev
                  + _sigmoid(gate(1)) * jnp.tanh(gate(3)))

        # ---- inner MIMS ConvLSTM (x = diff_h, h_t = c, c_t = convlstm_c) ----
        ii = _sigmoid(gate(6) + c_t * ctw[0:N])
        ff = _sigmoid(gate(7) + c_t * ctw[N:2 * N] + 1.0)
        c_new = ff * c_t + ii * jnp.tanh(gate(8))
        mims_h = _sigmoid(gate(9) + c_new * ocw) * jnp.tanh(c_new)

        c_next = mims_h + i * g

        # ---- fused 1x1 conv_last + output gate -------------------------------
        wl = wlast_ref[...]
        cell = jnp.concatenate([c_next, m_next], axis=0).astype(wl.dtype)
        z = jnp.dot(wl, cell, preferred_element_type=jnp.float32)   # (N, HW)
        h_next = o * jnp.tanh(z)

        # ---- one packed lane-dense store: [h ; c_next ; m_next ; c_new] -----
        out_ref[0] = jnp.concatenate(
            [h_next, c_next, m_next, c_new], axis=0).astype(out_ref.dtype)

    return kernel


# -----------------------------------------------------------------------------
# Module wrapper
# -----------------------------------------------------------------------------
class MIMBlockPallas:
    def __init__(self, in_channel, num_hidden, height, width,
                 filter_size, stride, layer_norm, key,
                 mxu_dtype=jnp.bfloat16):
        assert stride == 1, "only stride=1 supported"        # TODO(synk): stride>1
        assert not layer_norm, "layer_norm=False config"     # TODO(synk): layer_norm
        self.in_channel = in_channel
        self.num_hidden = num_hidden
        self.height, self.width = height, width
        self.filter_size = filter_size
        self.mxu_dtype = mxu_dtype
        self._forget_bias = 1.0

        N, C, k = num_hidden, in_channel, filter_size
        H, W = height, width
        HW = H * W
        ks = jax.random.split(key, 8)
        rnd = lambda kk, shape: 0.1 * jax.random.normal(kk, shape, jnp.float32)

        # parameters in PyTorch layouts (shapes match the nn.Module __init__)
        self.ct_weight = rnd(ks[0], (2 * N, H, W))
        self.oc_weight = rnd(ks[1], (N, H, W))
        self.pt_w_t = rnd(ks[2], (3 * N, C, k, k))       # conv_t_cc  (on h)
        self.pt_w_s = rnd(ks[3], (4 * N, N, k, k))       # conv_s_cc  (on m)
        self.pt_w_x = rnd(ks[4], (4 * N, N, k, k))       # conv_x_cc  (on x)
        self.pt_w_h = rnd(ks[5], (4 * N, N, k, k))       # conv_h_concat (on c)
        self.pt_w_xm = rnd(ks[6], (4 * N, N, k, k))      # conv_x_concat (on diff_h)
        self.pt_w_last = rnd(ks[7], (N, 2 * N, 1, 1))    # conv_last (1x1, no bias)

        # --- kernel-layout weights -------------------------------------------
        # (10N, taps*cin) bf16 fused conv weight (gate additions folded in)
        self.w_fused = self._build_fused_conv_weight().astype(mxu_dtype)
        self.w_last2 = self.pt_w_last[:, :, 0, 0].astype(mxu_dtype)   # (N, 2N)
        self.ctw2 = self.ct_weight.reshape(2 * N, HW)                 # f32
        self.ocw2 = self.oc_weight.reshape(N, HW)                     # f32
        self._fn_cache = {}

    # Fused block-structured weight, rows = (tap, [h|m|x|c|diff_h] channels),
    # then transposed so the matmul directly produces the (10N, HW) layout.
    def _build_fused_conv_weight(self):
        N, C, fs = self.num_hidden, self.in_channel, self.filter_size
        cin_total = C + 4 * N
        to_hwio = lambda a: jnp.transpose(a, (2, 3, 1, 0))
        wt = to_hwio(self.pt_w_t)      # (fs,fs,C,3N)
        ws = to_hwio(self.pt_w_s)      # (fs,fs,N,4N)
        wx = to_hwio(self.pt_w_x)
        wh = to_hwio(self.pt_w_h)
        wxm = to_hwio(self.pt_w_xm)

        def g4(w):
            return w[..., 0:N], w[..., N:2 * N], w[..., 2 * N:3 * N], w[..., 3 * N:4 * N]

        wt_i, wt_g, wt_o = wt[..., 0:N], wt[..., N:2 * N], wt[..., 2 * N:3 * N]
        ws_i, ws_g, ws_f, ws_o = g4(ws)
        wx_i, wx_g, wx_f, wx_o = g4(wx)
        wh_i, wh_g, wh_f, wh_o = g4(wh)
        wxm_i, wxm_g, wxm_f, wxm_o = g4(wxm)

        off_h, off_m, off_x, off_c, off_d = 0, C, C + N, C + 2 * N, C + 3 * N
        Wf = jnp.zeros((fs, fs, cin_total, 10 * N), jnp.float32)

        def put(Wf, row_off, blk, col):
            n_in = blk.shape[2]
            return Wf.at[:, :, row_off:row_off + n_in,
                         col * N:(col + 1) * N].set(blk)

        Wf = put(Wf, off_x, wx_i, 0); Wf = put(Wf, off_h, wt_i, 0)   # i_x+i_t
        Wf = put(Wf, off_x, wx_i, 1); Wf = put(Wf, off_m, ws_i, 1)   # i_x+i_s
        Wf = put(Wf, off_x, wx_g, 2); Wf = put(Wf, off_h, wt_g, 2)   # g_x+g_t
        Wf = put(Wf, off_x, wx_g, 3); Wf = put(Wf, off_m, ws_g, 3)   # g_x+g_s
        Wf = put(Wf, off_x, wx_f, 4); Wf = put(Wf, off_m, ws_f, 4)   # f_x+f_s
        Wf = put(Wf, off_x, wx_o, 5); Wf = put(Wf, off_h, wt_o, 5)   # o_x+o_t+o_s
        Wf = put(Wf, off_m, ws_o, 5)
        Wf = put(Wf, off_c, wh_i, 6); Wf = put(Wf, off_d, wxm_i, 6)  # i_h+i_xm
        Wf = put(Wf, off_c, wh_f, 7); Wf = put(Wf, off_d, wxm_f, 7)  # f_h+f_xm
        Wf = put(Wf, off_c, wh_g, 8); Wf = put(Wf, off_d, wxm_g, 8)  # g_h+g_xm
        Wf = put(Wf, off_c, wh_o, 9); Wf = put(Wf, off_d, wxm_o, 9)  # o_h+o_xm
        # row index = (ky*fs + kx)*cin_total + channel   (matches patch layout)
        return jnp.transpose(Wf.reshape(fs * fs * cin_total, 10 * N), (1, 0))

    def _get_fn(self, B):
        if B in self._fn_cache:
            return self._fn_cache[B]
        N, C = self.num_hidden, self.in_channel
        H, W, fs = self.height, self.width, self.filter_size
        HW = H * W
        cin = C + 4 * N
        taps = fs * fs
        kernel = _make_fused_kernel(H, W, N, C, fs)

        state_spec = lambda ch: pl.BlockSpec((1, ch, HW), lambda b: (b, 0, 0))
        pinned = lambda shape: pl.BlockSpec(shape, lambda b: (0,) * len(shape))

        itemsize = jnp.dtype(self.mxu_dtype).itemsize
        flops = 2 * B * HW * (taps * cin) * (10 * N) + 2 * B * HW * (2 * N) * N
        bytes_accessed = (4 * B * HW * (C + 5 * N)          # activation inputs
                          + 4 * B * HW * 4 * N              # packed outputs
                          + self.w_fused.size * itemsize
                          + self.w_last2.size * itemsize
                          + 4 * (self.ctw2.size + self.ocw2.size))

        fn = pl.pallas_call(
            kernel,
            out_shape=jax.ShapeDtypeStruct((B, 4 * N, HW), jnp.float32),
            grid=(B,),
            in_specs=[
                state_spec(C),                     # h
                state_spec(N),                     # m
                state_spec(N),                     # x (conv_x_cc has N in-ch)
                state_spec(N),                     # c
                state_spec(N),                     # diff_h
                state_spec(N),                     # convlstm_c
                pinned((10 * N, taps * cin)),      # fused conv weight
                pinned((2 * N, HW)),               # ct_weight
                pinned((N, HW)),                   # oc_weight
                pinned((N, 2 * N)),                # conv_last weight
            ],
            out_specs=pl.BlockSpec((1, 4 * N, HW), lambda b: (b, 0, 0)),
            scratch_shapes=[pltpu.VMEM((taps * cin, HW), jnp.float32)],
            compiler_params=pltpu.CompilerParams(
                dimension_semantics=("parallel",)),
            cost_estimate=pl.CostEstimate(
                flops=int(flops),
                transcendentals=int(B * HW * N * 12),
                bytes_accessed=int(bytes_accessed)),
        )
        self._fn_cache[B] = fn
        return fn

    # ------------------ Pallas forward (NCHW in / NCHW out) -------------------
    # Returns (h_next, c_next, m_next, convlstm_c_next); thread convlstm_c_next
    # back in on the next timestep (mirrors self.convlstm_c in the PyTorch code).
    def __call__(self, x, diff_h, h, c, m, convlstm_c=None):
        N, H, W = self.num_hidden, self.height, self.width
        HW = H * W
        B = x.shape[0]
        flat = lambda a: a.reshape(B, a.shape[1], HW).astype(jnp.float32)
        x2, dh2, h2, c2, m2 = map(flat, (x, diff_h, h, c, m))
        cl2 = (jnp.zeros((B, N, HW), jnp.float32) if convlstm_c is None
               else flat(convlstm_c))

        out = self._get_fn(B)(h2, m2, x2, c2, dh2, cl2,
                              self.w_fused, self.ctw2, self.ocw2, self.w_last2)

        def unpack(idx):
            return out[:, idx * N:(idx + 1) * N, :].reshape(B, N, H, W)

        return unpack(0), unpack(1), unpack(2), unpack(3)

    # -------------- pure-JAX reference (mirrors the PyTorch code) -------------
    def reference_forward(self, x, diff_h, h, c, m, convlstm_c=None):
        N = self.num_hidden
        pad = self.filter_size // 2

        def conv(inp, w_pt, p):
            return jax.lax.conv_general_dilated(
                inp, w_pt, window_strides=(1, 1), padding=[(p, p), (p, p)],
                dimension_numbers=('NCHW', 'OIHW', 'NCHW'))

        t_cc = conv(h, self.pt_w_t, pad)
        s_cc = conv(m, self.pt_w_s, pad)
        x_cc = conv(x, self.pt_w_x, pad)
        i_s, g_s, f_s, o_s = jnp.split(s_cc, 4, axis=1)
        i_t, g_t, o_t = jnp.split(t_cc, 3, axis=1)
        i_x, g_x, f_x, o_x = jnp.split(x_cc, 4, axis=1)
        i = _sigmoid(i_x + i_t)
        i_ = _sigmoid(i_x + i_s)
        g = jnp.tanh(g_x + g_t)
        g_ = jnp.tanh(g_x + g_s)
        f_ = _sigmoid(f_x + f_s + self._forget_bias)
        o = _sigmoid(o_x + o_t + o_s)
        m_next = f_ * m + i_ * g_

        # MIMS(diff_h, h_t=c, c_t=convlstm_c or zeros)
        c_t = jnp.zeros_like(diff_h) if convlstm_c is None else convlstm_c
        h_concat = conv(c, self.pt_w_h, pad)
        i_h, g_h, f_h, o_h = jnp.split(h_concat, 4, axis=1)
        ct_act = jnp.tile(c_t, (1, 2, 1, 1)) * self.ct_weight[None]
        i_c, f_c = jnp.split(ct_act, 2, axis=1)
        x_concat = conv(diff_h, self.pt_w_xm, pad)
        i_xm, g_xm, f_xm, o_xm = jnp.split(x_concat, 4, axis=1)
        ii = _sigmoid(i_h + i_c + i_xm)
        ff = _sigmoid(f_h + f_c + f_xm + self._forget_bias)
        gg = g_h + g_xm
        oo = o_h + o_xm
        c_new = ff * c_t + ii * jnp.tanh(gg)
        o_c = c_new * self.oc_weight[None]
        mims_h = _sigmoid(oo + o_c) * jnp.tanh(c_new)

        c_next = mims_h + i * g
        cell = jnp.concatenate((c_next, m_next), axis=1)
        last = jax.lax.conv_general_dilated(
            cell, self.pt_w_last, (1, 1), [(0, 0), (0, 0)],
            dimension_numbers=('NCHW', 'OIHW', 'NCHW'))
        h_next = o * jnp.tanh(last)
        return h_next, c_next, m_next, c_new


if __name__ == "__main__":
    B, C, H, W = 2, 8, 16, 16     # in_channel == num_hidden == 8
    N = 8
    key = jax.random.PRNGKey(0)
    kw, kd = jax.random.split(key)
    ks = jax.random.split(kd, 5)
    x = jax.random.normal(ks[0], (B, N, H, W), jnp.float32)       # conv_x_cc: N in-ch
    diff_h = jax.random.normal(ks[1], (B, N, H, W), jnp.float32)
    h = jax.random.normal(ks[2], (B, C, H, W), jnp.float32)       # conv_t_cc: C in-ch
    c = jax.random.normal(ks[3], (B, N, H, W), jnp.float32)
    m = jax.random.normal(ks[4], (B, N, H, W), jnp.float32)

    def check(block, tol):
        # step 1 (inner ConvLSTM state starts at zeros)
        h1, c1, m1, cl1 = block(x, diff_h, h, c, m)
        jax.block_until_ready((h1, c1, m1, cl1))
        rh1, rc1, rm1, rcl1 = block.reference_forward(x, diff_h, h, c, m)
        # step 2: thread the inner ConvLSTM state (same f32 step-1 states into
        # both paths so only single-step numerical error is measured)
        h2, c2, m2, cl2 = block(x, diff_h, rh1, rc1, rm1, convlstm_c=rcl1)
        jax.block_until_ready((h2, c2, m2, cl2))
        rh2, rc2, rm2, rcl2 = block.reference_forward(x, diff_h, rh1, rc1, rm1,
                                                      convlstm_c=rcl1)
        for got, ref in ((h1, rh1), (c1, rc1), (m1, rm1), (cl1, rcl1),
                         (h2, rh2), (c2, rc2), (m2, rm2), (cl2, rcl2)):
            assert got.shape == ref.shape, (got.shape, ref.shape)
            err = float(jnp.max(jnp.abs(got - ref)))
            assert err <= tol, (err, tol)

    # exact f32 MXU path: must match the reference tightly
    check(MIMBlockPallas(C, N, H, W, 3, 1, False, key=kw,
                         mxu_dtype=jnp.float32), tol=1e-3)
    # default bf16 MXU operands (f32 accumulation): tolerance scaled to bf16
    # input rounding accumulated over the K=360 contraction
    check(MIMBlockPallas(C, N, H, W, 3, 1, False, key=kw,
                         mxu_dtype=jnp.bfloat16), tol=4e-2)

    print("KERNEL_OK")
</pallas_src>

<mosaic_0001>
module attributes {stable_mosaic.version = 11 : i64} {
  func.func @kernel(%arg0: i32, %arg1: memref<1x8x256xf32, #tpu.memory_space<vmem>>, %arg2: memref<1x8x256xf32, #tpu.memory_space<vmem>>, %arg3: memref<1x8x256xf32, #tpu.memory_space<vmem>>, %arg4: memref<1x8x256xf32, #tpu.memory_space<vmem>>, %arg5: memref<1x8x256xf32, #tpu.memory_space<vmem>>, %arg6: memref<1x8x256xf32, #tpu.memory_space<vmem>>, %arg7: memref<80x360xf32, #tpu.memory_space<vmem>>, %arg8: memref<16x256xf32, #tpu.memory_space<vmem>>, %arg9: memref<8x256xf32, #tpu.memory_space<vmem>>, %arg10: memref<8x16xf32, #tpu.memory_space<vmem>>, %arg11: memref<1x32x256xf32, #tpu.memory_space<vmem>>, %arg12: memref<360x256xf32, #tpu.memory_space<vmem>>) attributes {dimension_semantics = [#tpu.dimension_semantics<parallel>], iteration_bounds = array<i64: 2>, scalar_prefetch = 0 : i64, scratch_operands = 1 : i64, tpu.core_type = #tpu.core_type<tc>, window_params = [{transform_indices = @transform_0, window_bounds = array<i64: 1, 8, 256>}, {transform_indices = @transform_1, window_bounds = array<i64: 1, 8, 256>}, {transform_indices = @transform_2, window_bounds = array<i64: 1, 8, 256>}, {transform_indices = @transform_3, window_bounds = array<i64: 1, 8, 256>}, {transform_indices = @transform_4, window_bounds = array<i64: 1, 8, 256>}, {transform_indices = @transform_5, window_bounds = array<i64: 1, 8, 256>}, {pipeline_mode = #tpu.pipeline_mode<synchronous>, transform_indices = @transform_6, window_bounds = array<i64: 80, 360>}, {pipeline_mode = #tpu.pipeline_mode<synchronous>, transform_indices = @transform_7, window_bounds = array<i64: 16, 256>}, {pipeline_mode = #tpu.pipeline_mode<synchronous>, transform_indices = @transform_8, window_bounds = array<i64: 8, 256>}, {pipeline_mode = #tpu.pipeline_mode<synchronous>, transform_indices = @transform_9, window_bounds = array<i64: 8, 16>}, {transform_indices = @transform_10, window_bounds = array<i64: 1, 32, 256>}]} {
    %c0 = arith.constant 0 : index
    %c0_0 = arith.constant 0 : index
    %c0_1 = arith.constant 0 : index
    %0 = vector.load %arg1[%c0, %c0_0, %c0_1] : memref<1x8x256xf32, #tpu.memory_space<vmem>>, vector<1x8x256xf32>
    %1 = vector.shape_cast %0 : vector<1x8x256xf32> to vector<8x256xf32>
    %c0_2 = arith.constant 0 : index
    %c0_3 = arith.constant 0 : index
    %c0_4 = arith.constant 0 : index
    %2 = vector.load %arg2[%c0_2, %c0_3, %c0_4] : memref<1x8x256xf32, #tpu.memory_space<vmem>>, vector<1x8x256xf32>
    %3 = vector.shape_cast %2 : vector<1x8x256xf32> to vector<8x256xf32>
    %c0_5 = arith.constant 0 : index
    %c0_6 = arith.constant 0 : index
    %c0_7 = arith.constant 0 : index
    %4 = vector.load %arg3[%c0_5, %c0_6, %c0_7] : memref<1x8x256xf32, #tpu.memory_space<vmem>>, vector<1x8x256xf32>
    %5 = vector.shape_cast %4 : vector<1x8x256xf32> to vector<8x256xf32>
    %c0_8 = arith.constant 0 : index
    %c0_9 = arith.constant 0 : index
    %c0_10 = arith.constant 0 : index
    %6 = vector.load %arg4[%c0_8, %c0_9, %c0_10] : memref<1x8x256xf32, #tpu.memory_space<vmem>>, vector<1x8x256xf32>
    %7 = vector.shape_cast %6 : vector<1x8x256xf32> to vector<8x256xf32>
    %c0_11 = arith.constant 0 : index
    %c0_12 = arith.constant 0 : index
    %c0_13 = arith.constant 0 : index
    %8 = vector.load %arg5[%c0_11, %c0_12, %c0_13] : memref<1x8x256xf32, #tpu.memory_space<vmem>>, vector<1x8x256xf32>
    %9 = vector.shape_cast %8 : vector<1x8x256xf32> to vector<8x256xf32>
    %10 = tpu.concatenate %1, %3, %5, %7, %9 in 0 : vector<8x256xf32>, vector<8x256xf32>, vector<8x256xf32>, vector<8x256xf32>, vector<8x256xf32> -> vector<40x256xf32>
    %11 = tpu.iota {dimensions = array<i32: 1>} : vector<1x256xi32>
    %c16_i32 = arith.constant 16 : i32
    %c0_i32 = arith.constant 0 : i32
    %12 = arith.cmpi eq, %c16_i32, %c0_i32 : i32
    %c1_i32 = arith.constant 1 : i32
    %13 = arith.select %12, %c1_i32, %c16_i32 : i32
    %14 = vector.broadcast %13 : i32 to vector<1x256xi32>
    %15 = arith.remsi %11, %14 : vector<1x256xi32>
    %c0_i32_14 = arith.constant 0 : i32
    %16 = vector.broadcast %c0_i32_14 : i32 to vector<1x256xi32>
    %17 = arith.cmpi ne, %15, %16 : vector<1x256xi32>
    %c0_i32_15 = arith.constant 0 : i32
    %18 = vector.broadcast %c0_i32_15 : i32 to vector<1x256xi32>
    %19 = arith.cmpi slt, %15, %18 : vector<1x256xi32>
    %c0_i32_16 = arith.constant 0 : i32
    %20 = arith.cmpi slt, %13, %c0_i32_16 : i32
    %21 = vector.broadcast %20 : i1 to vector<1x256xi1>
    %22 = vector.broadcast %21 : vector<1x256xi1> to vector<1x256xi1>
    %23 = arith.xori %19, %22 : vector<1x256xi1>
    %24 = arith.andi %23, %17 : vector<1x256xi1>
    %25 = vector.broadcast %13 : i32 to vector<1x256xi32>
    %26 = arith.addi %15, %25 : vector<1x256xi32>
    %27 = arith.select %24, %26, %15 : vector<1x256xi1>, vector<1x256xi32>
    %cst = arith.constant 0.000000e+00 : f32
    %28 = vector.broadcast %cst : f32 to vector<40x17xf32>
    %29 = vector.extract_strided_slice %10 {offsets = [0, 0], sizes = [40, 239], strides = [1, 1]} : vector<40x256xf32> to vector<40x239xf32>
    %30 = tpu.concatenate %28, %29 in 1 : vector<40x17xf32>, vector<40x239xf32> -> vector<40x256xf32>
    %c-1_i32 = arith.constant -1 : i32
    %31 = vector.broadcast %c-1_i32 : i32 to vector<1x256xi32>
    %32 = arith.addi %27, %31 : vector<1x256xi32>
    %c0_i32_17 = arith.constant 0 : i32
    %33 = vector.broadcast %c0_i32_17 : i32 to vector<1x256xi32>
    %34 = arith.cmpi sge, %32, %33 : vector<1x256xi32>
    %c-1_i32_18 = arith.constant -1 : i32
    %35 = vector.broadcast %c-1_i32_18 : i32 to vector<1x256xi32>
    %36 = arith.addi %27, %35 : vector<1x256xi32>
    %c16_i32_19 = arith.constant 16 : i32
    %37 = vector.broadcast %c16_i32_19 : i32 to vector<1x256xi32>
    %38 = arith.cmpi slt, %36, %37 : vector<1x256xi32>
    %39 = arith.andi %34, %38 : vector<1x256xi1>
    %cst_20 = arith.constant 0.000000e+00 : f32
    %40 = vector.shape_cast %39 : vector<1x256xi1> to vector<1x256xi1>
    %41 = vector.broadcast %40 : vector<1x256xi1> to vector<40x256xi1>
    %42 = vector.broadcast %cst_20 : f32 to vector<40x256xf32>
    %43 = arith.select %41, %30, %42 : vector<40x256xi1>, vector<40x256xf32>
    %c0_21 = arith.constant 0 : index
    %c0_22 = arith.constant 0 : index
    %44 = vector.load %arg12[%c0_21, %c0_22] : memref<360x256xf32, #tpu.memory_space<vmem>>, vector<40x256xf32>
    tpu.vector_store %arg12[%c0_21, %c0_22], %43 {strides = array<i32>} : memref<360x256xf32, #tpu.memory_space<vmem>>, vector<40x256xf32>,
    %cst_23 = arith.constant 0.000000e+00 : f32
    %45 = vector.broadcast %cst_23 : f32 to vector<40x16xf32>
    %46 = vector.extract_strided_slice %10 {offsets = [0, 0], sizes = [40, 240], strides = [1, 1]} : vector<40x256xf32> to vector<40x240xf32>
    %47 = tpu.concatenate %45, %46 in 1 : vector<40x16xf32>, vector<40x240xf32> -> vector<40x256xf32>
    %c40 = arith.constant 40 : index
    %c0_24 = arith.constant 0 : index
    %48 = vector.load %arg12[%c40, %c0_24] : memref<360x256xf32, #tpu.memory_space<vmem>>, vector<40x256xf32>
    tpu.vector_store %arg12[%c40, %c0_24], %47 {strides = array<i32>} : memref<360x256xf32, #tpu.memory_space<vmem>>, vector<40x256xf32>,
    %cst_25 = arith.constant 0.000000e+00 : f32
    %49 = vector.broadcast %cst_25 : f32 to vector<40x15xf32>
    %50 = vector.extract_strided_slice %10 {offsets = [0, 0], sizes = [40, 241], strides = [1, 1]} : vector<40x256xf32> to vector<40x241xf32>
    %51 = tpu.concatenate %49, %50 in 1 : vector<40x15xf32>, vector<40x241xf32> -> vector<40x256xf32>
    %c1_i32_26 = arith.constant 1 : i32
    %52 = vector.broadcast %c1_i32_26 : i32 to vector<1x256xi32>
    %53 = arith.addi %27, %52 : vector<1x256xi32>
    %c0_i32_27 = arith.constant 0 : i32
    %54 = vector.broadcast %c0_i32_27 : i32 to vector<1x256xi32>
    %55 = arith.cmpi sge, %53, %54 : vector<1x256xi32>
    %c1_i32_28 = arith.constant 1 : i32
    %56 = vector.broadcast %c1_i32_28 : i32 to vector<1x256xi32>
    %57 = arith.addi %27, %56 : vector<1x256xi32>
    %c16_i32_29 = arith.constant 16 : i32
    %58 = vector.broadcast %c16_i32_29 : i32 to vector<1x256xi32>
    %59 = arith.cmpi slt, %57, %58 : vector<1x256xi32>
    %60 = arith.andi %55, %59 : vector<1x256xi1>
    %cst_30 = arith.constant 0.000000e+00 : f32
    %61 = vector.shape_cast %60 : vector<1x256xi1> to vector<1x256xi1>
    %62 = vector.broadcast %61 : vector<1x256xi1> to vector<40x256xi1>
    %63 = vector.broadcast %cst_30 : f32 to vector<40x256xf32>
    %64 = arith.select %62, %51, %63 : vector<40x256xi1>, vector<40x256xf32>
    %c80 = arith.constant 80 : index
    %c0_31 = arith.constant 0 : index
    %65 = vector.load %arg12[%c80, %c0_31] : memref<360x256xf32, #tpu.memory_space<vmem>>, vector<40x256xf32>
    tpu.vector_store %arg12[%c80, %c0_31], %64 {strides = array<i32>} : memref<360x256xf32, #tpu.memory_space<vmem>>, vector<40x256xf32>,
    %cst_32 = arith.constant 0.000000e+00 : f32
    %66 = vector.broadcast %cst_32 : f32 to vector<40x1xf32>
    %67 = vector.extract_strided_slice %10 {offsets = [0, 0], sizes = [40, 255], strides = [1, 1]} : vector<40x256xf32> to vector<40x255xf32>
    %68 = tpu.concatenate %66, %67 in 1 : vector<40x1xf32>, vector<40x255xf32> -> vector<40x256xf32>
    %c-1_i32_33 = arith.constant -1 : i32
    %69 = vector.broadcast %c-1_i32_33 : i32 to vector<1x256xi32>
    %70 = arith.addi %27, %69 : vector<1x256xi32>
    %c0_i32_34 = arith.constant 0 : i32
    %71 = vector.broadcast %c0_i32_34 : i32 to vector<1x256xi32>
    %72 = arith.cmpi sge, %70, %71 : vector<1x256xi32>
    %c-1_i32_35 = arith.constant -1 : i32
    %73 = vector.broadcast %c-1_i32_35 : i32 to vector<1x256xi32>
    %74 = arith.addi %27, %73 : vector<1x256xi32>
    %c16_i32_36 = arith.constant 16 : i32
    %75 = vector.broadcast %c16_i32_36 : i32 to vector<1x256xi32>
    %76 = arith.cmpi slt, %74, %75 : vector<1x256xi32>
    %77 = arith.andi %72, %76 : vector<1x256xi1>
    %cst_37 = arith.constant 0.000000e+00 : f32
    %78 = vector.shape_cast %77 : vector<1x256xi1> to vector<1x256xi1>
    %79 = vector.broadcast %78 : vector<1x256xi1> to vector<40x256xi1>
    %80 = vector.broadcast %cst_37 : f32 to vector<40x256xf32>
    %81 = arith.select %79, %68, %80 : vector<40x256xi1>, vector<40x256xf32>
    %c120 = arith.constant 120 : index
    %c0_38 = arith.constant 0 : index
    %82 = vector.load %arg12[%c120, %c0_38] : memref<360x256xf32, #tpu.memory_space<vmem>>, vector<40x256xf32>
    tpu.vector_store %arg12[%c120, %c0_38], %81 {strides = array<i32>} : memref<360x256xf32, #tpu.memory_space<vmem>>, vector<40x256xf32>,
    %c160 = arith.constant 160 : index
    %c0_39 = arith.constant 0 : index
    %83 = vector.load %arg12[%c160, %c0_39] : memref<360x256xf32, #tpu.memory_space<vmem>>, vector<40x256xf32>
    tpu.vector_store %arg12[%c160, %c0_39], %10 {strides = array<i32>} : memref<360x256xf32, #tpu.memory_space<vmem>>, vector<40x256xf32>,
    %84 = vector.extract_strided_slice %10 {offsets = [0, 1], sizes = [40, 255], strides = [1, 1]} : vector<40x256xf32> to vector<40x255xf32>
    %cst_40 = arith.constant 0.000000e+00 : f32
    %85 = vector.broadcast %cst_40 : f32 to vector<40x1xf32>
    %86 = tpu.concatenate %84, %85 in 1 : vector<40x255xf32>, vector<40x1xf32> -> vector<40x256xf32>
    %c1_i32_41 = arith.constant 1 : i32
    %87 = vector.broadcast %c1_i32_41 : i32 to vector<1x256xi32>
    %88 = arith.addi %27, %87 : vector<1x256xi32>
    %c0_i32_42 = arith.constant 0 : i32
    %89 = vector.broadcast %c0_i32_42 : i32 to vector<1x256xi32>
    %90 = arith.cmpi sge, %88, %89 : vector<1x256xi32>
    %c1_i32_43 = arith.constant 1 : i32
    %91 = vector.broadcast %c1_i32_43 : i32 to vector<1x256xi32>
    %92 = arith.addi %27, %91 : vector<1x256xi32>
    %c16_i32_44 = arith.constant 16 : i32
    %93 = vector.broadcast %c16_i32_44 : i32 to vector<1x256xi32>
    %94 = arith.cmpi slt, %92, %93 : vector<1x256xi32>
    %95 = arith.andi %90, %94 : vector<1x256xi1>
    %cst_45 = arith.constant 0.000000e+00 : f32
    %96 = vector.shape_cast %95 : vector<1x256xi1> to vector<1x256xi1>
    %97 = vector.broadcast %96 : vector<1x256xi1> to vector<40x256xi1>
    %98 = vector.broadcast %cst_45 : f32 to vector<40x256xf32>
    %99 = arith.select %97, %86, %98 : vector<40x256xi1>, vector<40x256xf32>
    %c200 = arith.constant 200 : index
    %c0_46 = arith.constant 0 : index
    %100 = vector.load %arg12[%c200, %c0_46] : memref<360x256xf32, #tpu.memory_space<vmem>>, vector<40x256xf32>
    tpu.vector_store %arg12[%c200, %c0_46], %99 {strides = array<i32>} : memref<360x256xf32, #tpu.memory_space<vmem>>, vector<40x256xf32>,
    %101 = vector.extract_strided_slice %10 {offsets = [0, 15], sizes = [40, 241], strides = [1, 1]} : vector<40x256xf32> to vector<40x241xf32>
    %cst_47 = arith.constant 0.000000e+00 : f32
    %102 = vector.broadcast %cst_47 : f32 to vector<40x15xf32>
    %103 = tpu.concatenate %101, %102 in 1 : vector<40x241xf32>, vector<40x15xf32> -> vector<40x256xf32>
    %c-1_i32_48 = arith.constant -1 : i32
    %104 = vector.broadcast %c-1_i32_48 : i32 to vector<1x256xi32>
    %105 = arith.addi %27, %104 : vector<1x256xi32>
    %c0_i32_49 = arith.constant 0 : i32
    %106 = vector.broadcast %c0_i32_49 : i32 to vector<1x256xi32>
    %107 = arith.cmpi sge, %105, %106 : vector<1x256xi32>
    %c-1_i32_50 = arith.constant -1 : i32
    %108 = vector.broadcast %c-1_i32_50 : i32 to vector<1x256xi32>
    %109 = arith.addi %27, %108 : vector<1x256xi32>
    %c16_i32_51 = arith.constant 16 : i32
    %110 = vector.broadcast %c16_i32_51 : i32 to vector<1x256xi32>
    %111 = arith.cmpi slt, %109, %110 : vector<1x256xi32>
    %112 = arith.andi %107, %111 : vector<1x256xi1>
    %cst_52 = arith.constant 0.000000e+00 : f32
    %113 = vector.shape_cast %112 : vector<1x256xi1> to vector<1x256xi1>
    %114 = vector.broadcast %113 : vector<1x256xi1> to vector<40x256xi1>
    %115 = vector.broadcast %cst_52 : f32 to vector<40x256xf32>
    %116 = arith.select %114, %103, %115 : vector<40x256xi1>, vector<40x256xf32>
    %c240 = arith.constant 240 : index
    %c0_53 = arith.constant 0 : index
    %117 = vector.load %arg12[%c240, %c0_53] : memref<360x256xf32, #tpu.memory_space<vmem>>, vector<40x256xf32>
    tpu.vector_store %arg12[%c240, %c0_53], %116 {strides = array<i32>} : memref<360x256xf32, #tpu.memory_space<vmem>>, vector<40x256xf32>,
    %118 = vector.extract_strided_slice %10 {offsets = [0, 16], sizes = [40, 240], strides = [1, 1]} : vector<40x256xf32> to vector<40x240xf32>
    %cst_54 = arith.constant 0.000000e+00 : f32
    %119 = vector.broadcast %cst_54 : f32 to vector<40x16xf32>
    %120 = tpu.concatenate %118, %119 in 1 : vector<40x240xf32>, vector<40x16xf32> -> vector<40x256xf32>
    %c280 = arith.constant 280 : index
    %c0_55 = arith.constant 0 : index
    %121 = vector.load %arg12[%c280, %c0_55] : memref<360x256xf32, #tpu.memory_space<vmem>>, vector<40x256xf32>
    tpu.vector_store %arg12[%c280, %c0_55], %120 {strides = array<i32>} : memref<360x256xf32, #tpu.memory_space<vmem>>, vector<40x256xf32>,
    %122 = vector.extract_strided_slice %10 {offsets = [0, 17], sizes = [40, 239], strides = [1, 1]} : vector<40x256xf32> to vector<40x239xf32>
    %cst_56 = arith.constant 0.000000e+00 : f32
    %123 = vector.broadcast %cst_56 : f32 to vector<40x17xf32>
    %124 = tpu.concatenate %122, %123 in 1 : vector<40x239xf32>, vector<40x17xf32> -> vector<40x256xf32>
    %c1_i32_57 = arith.constant 1 : i32
    %125 = vector.broadcast %c1_i32_57 : i32 to vector<1x256xi32>
    %126 = arith.addi %27, %125 : vector<1x256xi32>
    %c0_i32_58 = arith.constant 0 : i32
    %127 = vector.broadcast %c0_i32_58 : i32 to vector<1x256xi32>
    %128 = arith.cmpi sge, %126, %127 : vector<1x256xi32>
    %c1_i32_59 = arith.constant 1 : i32
    %129 = vector.broadcast %c1_i32_59 : i32 to vector<1x256xi32>
    %130 = arith.addi %27, %129 : vector<1x256xi32>
    %c16_i32_60 = arith.constant 16 : i32
    %131 = vector.broadcast %c16_i32_60 : i32 to vector<1x256xi32>
    %132 = arith.cmpi slt, %130, %131 : vector<1x256xi32>
    %133 = arith.andi %128, %132 : vector<1x256xi1>
    %cst_61 = arith.constant 0.000000e+00 : f32
    %134 = vector.shape_cast %133 : vector<1x256xi1> to vector<1x256xi1>
    %135 = vector.broadcast %134 : vector<1x256xi1> to vector<40x256xi1>
    %136 = vector.broadcast %cst_61 : f32 to vector<40x256xf32>
    %137 = arith.select %135, %124, %136 : vector<40x256xi1>, vector<40x256xf32>
    %c320 = arith.constant 320 : index
    %c0_62 = arith.constant 0 : index
    %138 = vector.load %arg12[%c320, %c0_62] : memref<360x256xf32, #tpu.memory_space<vmem>>, vector<40x256xf32>
    tpu.vector_store %arg12[%c320, %c0_62], %137 {strides = array<i32>} : memref<360x256xf32, #tpu.memory_space<vmem>>, vector<40x256xf32>,
    %c0_63 = arith.constant 0 : index
    %c0_64 = arith.constant 0 : index
    %139 = vector.load %arg7[%c0_63, %c0_64] : memref<80x360xf32, #tpu.memory_space<vmem>>, vector<80x360xf32>
    %c0_65 = arith.constant 0 : index
    %c0_66 = arith.constant 0 : index
    %140 = vector.load %arg12[%c0_65, %c0_66] : memref<360x256xf32, #tpu.memory_space<vmem>>, vector<360x256xf32>
    %cst_67 = arith.constant dense<0.000000e+00> : vector<80x256xf32>
    %141 = tpu.matmul %139, %140, %cst_67 {dimension_numbers = #tpu.dot_dimension_numbers<[1], [0], [0], [1], [0, 0, 1, 1], [], []>} : vector<80x360xf32>, vector<360x256xf32>, vector<80x256xf32> -> vector<80x256xf32>
    %c0_68 = arith.constant 0 : index
    %c0_69 = arith.constant 0 : index
    %c0_70 = arith.constant 0 : index
    %142 = vector.load %arg2[%c0_68, %c0_69, %c0_70] : memref<1x8x256xf32, #tpu.memory_space<vmem>>, vector<1x8x256xf32>
    %143 = vector.shape_cast %142 : vector<1x8x256xf32> to vector<8x256xf32>
    %c0_71 = arith.constant 0 : index
    %c0_72 = arith.constant 0 : index
    %c0_73 = arith.constant 0 : index
    %144 = vector.load %arg6[%c0_71, %c0_72, %c0_73] : memref<1x8x256xf32, #tpu.memory_space<vmem>>, vector<1x8x256xf32>
    %145 = vector.shape_cast %144 : vector<1x8x256xf32> to vector<8x256xf32>
    %c0_74 = arith.constant 0 : index
    %c0_75 = arith.constant 0 : index
    %146 = vector.load %arg8[%c0_74, %c0_75] : memref<16x256xf32, #tpu.memory_space<vmem>>, vector<16x256xf32>
    %c0_76 = arith.constant 0 : index
    %c0_77 = arith.constant 0 : index
    %147 = vector.load %arg9[%c0_76, %c0_77] : memref<8x256xf32, #tpu.memory_space<vmem>>, vector<8x256xf32>
    %148 = vector.extract_strided_slice %141 {offsets = [0, 0], sizes = [8, 256], strides = [1, 1]} : vector<80x256xf32> to vector<8x256xf32>
    %cst_78 = arith.constant 0.000000e+00 : f32
    %149 = vector.broadcast %cst_78 : f32 to vector<8x256xf32>
    %150 = arith.subf %149, %148 : vector<8x256xf32>
    %151 = math.exp %150 : vector<8x256xf32>
    %cst_79 = arith.constant 1.000000e+00 : f32
    %152 = vector.broadcast %cst_79 : f32 to vector<8x256xf32>
    %153 = arith.addf %152, %151 : vector<8x256xf32>
    %cst_80 = arith.constant 1.000000e+00 : f32
    %154 = vector.broadcast %cst_80 : f32 to vector<8x256xf32>
    %155 = arith.divf %154, %153 : vector<8x256xf32>
    %156 = vector.extract_strided_slice %141 {offsets = [16, 0], sizes = [8, 256], strides = [1, 1]} : vector<80x256xf32> to vector<8x256xf32>
    %157 = math.tanh %156 : vector<8x256xf32>
    %158 = vector.extract_strided_slice %141 {offsets = [40, 0], sizes = [8, 256], strides = [1, 1]} : vector<80x256xf32> to vector<8x256xf32>
    %cst_81 = arith.constant 0.000000e+00 : f32
    %159 = vector.broadcast %cst_81 : f32 to vector<8x256xf32>
    %160 = arith.subf %159, %158 : vector<8x256xf32>
    %161 = math.exp %160 : vector<8x256xf32>
    %cst_82 = arith.constant 1.000000e+00 : f32
    %162 = vector.broadcast %cst_82 : f32 to vector<8x256xf32>
    %163 = arith.addf %162, %161 : vector<8x256xf32>
    %cst_83 = arith.constant 1.000000e+00 : f32
    %164 = vector.broadcast %cst_83 : f32 to vector<8x256xf32>
    %165 = arith.divf %164, %163 : vector<8x256xf32>
    %166 = vector.extract_strided_slice %141 {offsets = [32, 0], sizes = [8, 256], strides = [1, 1]} : vector<80x256xf32> to vector<8x256xf32>
    %cst_84 = arith.constant 1.000000e+00 : f32
    %167 = vector.broadcast %cst_84 : f32 to vector<8x256xf32>
    %168 = arith.addf %166, %167 : vector<8x256xf32>
    %cst_85 = arith.constant 0.000000e+00 : f32
    %169 = vector.broadcast %cst_85 : f32 to vector<8x256xf32>
    %170 = arith.subf %169, %168 : vector<8x256xf32>
    %171 = math.exp %170 : vector<8x256xf32>
    %cst_86 = arith.constant 1.000000e+00 : f32
    %172 = vector.broadcast %cst_86 : f32 to vector<8x256xf32>
    %173 = arith.addf %172, %171 : vector<8x256xf32>
    %cst_87 = arith.constant 1.000000e+00 : f32
    %174 = vector.broadcast %cst_87 : f32 to vector<8x256xf32>
    %175 = arith.divf %174, %173 : vector<8x256xf32>
    %176 = arith.mulf %175, %143 : vector<8x256xf32>
    %177 = vector.extract_strided_slice %141 {offsets = [8, 0], sizes = [8, 256], strides = [1, 1]} : vector<80x256xf32> to vector<8x256xf32>
    %cst_88 = arith.constant 0.000000e+00 : f32
    %178 = vector.broadcast %cst_88 : f32 to vector<8x256xf32>
    %179 = arith.subf %178, %177 : vector<8x256xf32>
    %180 = math.exp %179 : vector<8x256xf32>
    %cst_89 = arith.constant 1.000000e+00 : f32
    %181 = vector.broadcast %cst_89 : f32 to vector<8x256xf32>
    %182 = arith.addf %181, %180 : vector<8x256xf32>
    %cst_90 = arith.constant 1.000000e+00 : f32
    %183 = vector.broadcast %cst_90 : f32 to vector<8x256xf32>
    %184 = arith.divf %183, %182 : vector<8x256xf32>
    %185 = vector.extract_strided_slice %141 {offsets = [24, 0], sizes = [8, 256], strides = [1, 1]} : vector<80x256xf32> to vector<8x256xf32>
    %186 = math.tanh %185 : vector<8x256xf32>
    %187 = arith.mulf %184, %186 : vector<8x256xf32>
    %188 = arith.addf %176, %187 : vector<8x256xf32>
    %189 = vector.extract_strided_slice %141 {offsets = [48, 0], sizes = [8, 256], strides = [1, 1]} : vector<80x256xf32> to vector<8x256xf32>
    %190 = vector.extract_strided_slice %146 {offsets = [0, 0], sizes = [8, 256], strides = [1, 1]} : vector<16x256xf32> to vector<8x256xf32>
    %191 = arith.mulf %145, %190 : vector<8x256xf32>
    %192 = arith.addf %189, %191 : vector<8x256xf32>
    %cst_91 = arith.constant 0.000000e+00 : f32
    %193 = vector.broadcast %cst_91 : f32 to vector<8x256xf32>
    %194 = arith.subf %193, %192 : vector<8x256xf32>
    %195 = math.exp %194 : vector<8x256xf32>
    %cst_92 = arith.constant 1.000000e+00 : f32
    %196 = vector.broadcast %cst_92 : f32 to vector<8x256xf32>
    %197 = arith.addf %196, %195 : vector<8x256xf32>
    %cst_93 = arith.constant 1.000000e+00 : f32
    %198 = vector.broadcast %cst_93 : f32 to vector<8x256xf32>
    %199 = arith.divf %198, %197 : vector<8x256xf32>
    %200 = vector.extract_strided_slice %141 {offsets = [56, 0], sizes = [8, 256], strides = [1, 1]} : vector<80x256xf32> to vector<8x256xf32>
    %201 = vector.extract_strided_slice %146 {offsets = [8, 0], sizes = [8, 256], strides = [1, 1]} : vector<16x256xf32> to vector<8x256xf32>
    %202 = arith.mulf %145, %201 : vector<8x256xf32>
    %203 = arith.addf %200, %202 : vector<8x256xf32>
    %cst_94 = arith.constant 1.000000e+00 : f32
    %204 = vector.broadcast %cst_94 : f32 to vector<8x256xf32>
    %205 = arith.addf %203, %204 : vector<8x256xf32>
    %cst_95 = arith.constant 0.000000e+00 : f32
    %206 = vector.broadcast %cst_95 : f32 to vector<8x256xf32>
    %207 = arith.subf %206, %205 : vector<8x256xf32>
    %208 = math.exp %207 : vector<8x256xf32>
    %cst_96 = arith.constant 1.000000e+00 : f32
    %209 = vector.broadcast %cst_96 : f32 to vector<8x256xf32>
    %210 = arith.addf %209, %208 : vector<8x256xf32>
    %cst_97 = arith.constant 1.000000e+00 : f32
    %211 = vector.broadcast %cst_97 : f32 to vector<8x256xf32>
    %212 = arith.divf %211, %210 : vector<8x256xf32>
    %213 = arith.mulf %212, %145 : vector<8x256xf32>
    %214 = vector.extract_strided_slice %141 {offsets = [64, 0], sizes = [8, 256], strides = [1, 1]} : vector<80x256xf32> to vector<8x256xf32>
    %215 = math.tanh %214 : vector<8x256xf32>
    %216 = arith.mulf %199, %215 : vector<8x256xf32>
    %217 = arith.addf %213, %216 : vector<8x256xf32>
    %218 = vector.extract_strided_slice %141 {offsets = [72, 0], sizes = [8, 256], strides = [1, 1]} : vector<80x256xf32> to vector<8x256xf32>
    %219 = arith.mulf %217, %147 : vector<8x256xf32>
    %220 = arith.addf %218, %219 : vector<8x256xf32>
    %cst_98 = arith.constant 0.000000e+00 : f32
    %221 = vector.broadcast %cst_98 : f32 to vector<8x256xf32>
    %222 = arith.subf %221, %220 : vector<8x256xf32>
    %223 = math.exp %222 : vector<8x256xf32>
    %cst_99 = arith.constant 1.000000e+00 : f32
    %224 = vector.broadcast %cst_99 : f32 to vector<8x256xf32>
    %225 = arith.addf %224, %223 : vector<8x256xf32>
    %cst_100 = arith.constant 1.000000e+00 : f32
    %226 = vector.broadcast %cst_100 : f32 to vector<8x256xf32>
    %227 = arith.divf %226, %225 : vector<8x256xf32>
    %228 = math.tanh %217 : vector<8x256xf32>
    %229 = arith.mulf %227, %228 : vector<8x256xf32>
    %230 = arith.mulf %155, %157 : vector<8x256xf32>
    %231 = arith.addf %229, %230 : vector<8x256xf32>
    %c0_101 = arith.constant 0 : index
    %c0_102 = arith.constant 0 : index
    %232 = vector.load %arg10[%c0_101, %c0_102] : memref<8x16xf32, #tpu.memory_space<vmem>>, vector<8x16xf32>
    %233 = tpu.concatenate %231, %188 in 0 : vector<8x256xf32>, vector<8x256xf32> -> vector<16x256xf32>
    %cst_103 = arith.constant dense<0.000000e+00> : vector<8x256xf32>
    %234 = tpu.matmul %232, %233, %cst_103 {dimension_numbers = #tpu.dot_dimension_numbers<[1], [0], [0], [1], [0, 0, 1, 1], [], []>} : vector<8x16xf32>, vector<16x256xf32>, vector<8x256xf32> -> vector<8x256xf32>
    %235 = math.tanh %234 : vector<8x256xf32>
    %236 = arith.mulf %165, %235 : vector<8x256xf32>
    %237 = tpu.concatenate %236, %231, %188, %217 in 0 : vector<8x256xf32>, vector<8x256xf32>, vector<8x256xf32>, vector<8x256xf32> -> vector<32x256xf32>
    %c0_104 = arith.constant 0 : index
    %c0_105 = arith.constant 0 : index
    %c0_106 = arith.constant 0 : index
    %238 = vector.load %arg11[%c0_104, %c0_105, %c0_106] : memref<1x32x256xf32, #tpu.memory_space<vmem>>, vector<1x32x256xf32>
    %239 = vector.shape_cast %238 : vector<1x32x256xf32> to vector<32x256xf32>
    %240 = vector.shape_cast %237 : vector<32x256xf32> to vector<1x32x256xf32>
    tpu.vector_store %arg11[%c0_104, %c0_105, %c0_106], %240 {strides = array<i32>} : memref<1x32x256xf32, #tpu.memory_space<vmem>>, vector<1x32x256xf32>,
    return
  }
  func.func @transform_0(%arg0: i32) -> (i32, i32, i32) {
    %c0_i32 = arith.constant 0 : i32
    %c0_i32_0 = arith.constant 0 : i32
    %c0_i32_1 = arith.constant 0 : i32
    return %arg0, %c0_i32, %c0_i32_0 : i32, i32, i32
  }
  func.func @transform_1(%arg0: i32) -> (i32, i32, i32) {
    %c0_i32 = arith.constant 0 : i32
    %c0_i32_0 = arith.constant 0 : i32
    %c0_i32_1 = arith.constant 0 : i32
    return %arg0, %c0_i32, %c0_i32_0 : i32, i32, i32
  }
  func.func @transform_2(%arg0: i32) -> (i32, i32, i32) {
    %c0_i32 = arith.constant 0 : i32
    %c0_i32_0 = arith.constant 0 : i32
    %c0_i32_1 = arith.constant 0 : i32
    return %arg0, %c0_i32, %c0_i32_0 : i32, i32, i32
  }
  func.func @transform_3(%arg0: i32) -> (i32, i32, i32) {
    %c0_i32 = arith.constant 0 : i32
    %c0_i32_0 = arith.constant 0 : i32
    %c0_i32_1 = arith.constant 0 : i32
    return %arg0, %c0_i32, %c0_i32_0 : i32, i32, i32
  }
  func.func @transform_4(%arg0: i32) -> (i32, i32, i32) {
    %c0_i32 = arith.constant 0 : i32
    %c0_i32_0 = arith.constant 0 : i32
    %c0_i32_1 = arith.constant 0 : i32
    return %arg0, %c0_i32, %c0_i32_0 : i32, i32, i32
  }
  func.func @transform_5(%arg0: i32) -> (i32, i32, i32) {
    %c0_i32 = arith.constant 0 : i32
    %c0_i32_0 = arith.constant 0 : i32
    %c0_i32_1 = arith.constant 0 : i32
    return %arg0, %c0_i32, %c0_i32_0 : i32, i32, i32
  }
  func.func @transform_6(%arg0: i32) -> (i32, i32) {
    %c0_i32 = arith.constant 0 : i32
    %c0_i32_0 = arith.constant 0 : i32
    %c0_i32_1 = arith.constant 0 : i32
    return %c0_i32, %c0_i32_0 : i32, i32
  }
  func.func @transform_7(%arg0: i32) -> (i32, i32) {
    %c0_i32 = arith.constant 0 : i32
    %c0_i32_0 = arith.constant 0 : i32
    %c0_i32_1 = arith.constant 0 : i32
    return %c0_i32, %c0_i32_0 : i32, i32
  }
  func.func @transform_8(%arg0: i32) -> (i32, i32) {
    %c0_i32 = arith.constant 0 : i32
    %c0_i32_0 = arith.constant 0 : i32
    %c0_i32_1 = arith.constant 0 : i32
    return %c0_i32, %c0_i32_0 : i32, i32
  }
  func.func @transform_9(%arg0: i32) -> (i32, i32) {
    %c0_i32 = arith.constant 0 : i32
    %c0_i32_0 = arith.constant 0 : i32
    %c0_i32_1 = arith.constant 0 : i32
    return %c0_i32, %c0_i32_0 : i32, i32
  }
  func.func @transform_10(%arg0: i32) -> (i32, i32, i32) {
    %c0_i32 = arith.constant 0 : i32
    %c0_i32_0 = arith.constant 0 : i32
    %c0_i32_1 = arith.constant 0 : i32
    return %arg0, %c0_i32, %c0_i32_0 : i32, i32, i32
  }
}

</mosaic_0001>

<bundles_post_ra>
// kernel: tpu_custom_call.1
= control target key start
LH: loop header
LB: loop body
LE: loop exit
PB: predicated region body
PF: predicated region fallthrough
CT: control target
= control target key end

     0   :  { %s3838_s0 = inlined_call_operand.hbm [shape: f32[2,8,256], index: 0, kind: input, shape index: {}]   ;;  %s3839_s1 = inlined_call_operand.hbm [shape: f32[2,8,256], index: 1, kind: input, shape index: {}]   ;;  %s3840_s2 = inlined_call_operand.hbm [shape: f32[2,8,256], index: 2, kind: input, shape index: {}]   ;;  %s3841_s3 = inlined_call_operand.hbm [shape: f32[2,8,256], index: 3, kind: input, shape index: {}]   ;;  %s3842_s4 = inlined_call_operand.hbm [shape: f32[2,8,256], index: 4, kind: input, shape index: {}]   ;;  %s3843_s5 = inlined_call_operand.hbm [shape: f32[2,8,256], index: 5, kind: input, shape index: {}]   ;;  %s3844_s6 = inlined_call_operand.hbm [shape: f32[80,360], index: 6, kind: input, shape index: {}]   ;;  %s3845_s7 = inlined_call_operand.hbm [shape: f32[16,256], index: 7, kind: input, shape index: {}]   ;;  %s3846_s8 = inlined_call_operand.vmem [shape: f32[8,256], index: 8, kind: input, shape index: {}]   ;;  %s3847_s9 = inlined_call_operand.vmem [shape: f32[8,16], index: 9, kind: input, shape index: {}]   ;;  %s3848_s10 = inlined_call_operand.hbm [shape: f32[2,32,256], index: 10, kind: output, shape index: {}]  }
   0x1   :  { %3870 = sst [smem:[#allocation31_spill]] %s3838_s0 }
   0x2   :  { %3871 = sst [smem:[#allocation32_spill]] %s3839_s1 }
   0x3   :  { %3872 = sst [smem:[#allocation33_spill]] %s3841_s3 }
   0x4   :  { %3873 = sst [smem:[#allocation34_spill]] %s3844_s6 }
   0x5   :  { %3874 = sst [smem:[#allocation35_spill]] %s3848_s10 }
   0x6   :  { %15 = vsyncpa [#allocation4], 0 }
   0x7   :  { %17 = vsyncpa [#allocation4 + $0x1], 0 }
   0x8   :  { %18 = vsyncpa [#allocation7], 0 }
   0x9   :  { %20 = vsyncpa [#allocation7 + $0x1], 0 }
   0xa   :  { %21 = vsyncpa [#allocation10], 0 }
   0xb   :  { %23 = vsyncpa [#allocation10 + $0x1], 0 }
   0xc   :  { %24 = vsyncpa [#allocation13], 0 }
   0xd   :  { %26 = vsyncpa [#allocation13 + $0x1], 0 }
   0xe   :  { %27 = vsyncpa [#allocation16], 0 }
   0xf   :  { %28 = vsyncpa [#allocation5], 0 }
  0x10   :  { %30 = vsyncpa [#allocation5 + $0x1], 0  ;;  %s3037_s13 = smov 0   ;;  %s3039_s14 = smov 0  }
  0x11   :  { %s3041_s15 = smov 0   ;;  %s3043_s16 = smov 0  }
  0x12 LB: > { %3875 = sst [smem:[#allocation25_spill]] %s2944_s13  ;;  %s3058_s17 = sadd.s32 4294967295, %s2956_s16   ;;  %s2956_s16 = sphi %s3043_s16, %s3933_s16   ;;  %s2952_s15 = sphi %s3041_s15, %s3937_s15   ;;  %s2948_s14 = sphi %s3039_s14, %s3936_s14   ;;  %s2944_s13 = sphi %s3037_s13, %s3935_s13  }
  0x13   : > { %3876 = sst [smem:[#allocation26_spill]] %s2956_s16  ;;  %s1977_s18 = sadd.s32 4294967294, %s2956_s16  }
  0x14   : > { %s3062_s19 = sadd.s32 1, %s2956_s16   ;;  %s43_s20 = sadd.s32 1, %s2952_s15 }
  0x15   : > { %3877 = sst [smem:[#allocation27_spill]] %s3062_s19  ;;  %s40_s21 = ssub.s32 %s2956_s16, %s3062_s19 }
  0x16   : > { %p50_p0 = scmp.ne.s32.totalorder %s2952_s15, %s2948_s14  ;;  %p41_p1 = scmp.eq.s32.totalorder %s40_s21, 0 }
  0x17   : > { %p51_p2 = scmp.eq.s32.totalorder %s2956_s16, 0  ;;  %p56_p3 = scmp.ne.s32.totalorder %s2948_s14, %s2944_s13 }
  0x18   : > { %p3853_p4 = scmp.eq.s32.totalorder %s3058_s17, 0  ;;  %p294_p7 = scmp.eq.s32.totalorder %s3058_s17, 1 }
  0x19   : > { %s3074_s22 = scalar_select %p41_p1, %s2952_s15, %s43_s20  }
  0x1a   : > { %p3076_p5 = por %p51_p2, %p50_p0  ;;  %p3082_p6 = por %p3853_p4, %p56_p3 }
  0x1b   : > { %3878 = sst [smem:[#allocation28_spill]] %s3074_s22  ;;  %p300_p8 = scmp.eq.s32.totalorder %s1977_s18, 1 }
  0x1c   : > { %s3879_s23 = scalar_select %p3076_p5, 1, 0 }
  0x1d   : > { %s3880_s24 = scalar_select %p3082_p6, 1, 0 }
  0x1e   : > { %p1978_p9 = scmp.ge.s32.totalorder %s2956_s16, 1  ;;  %p307_p10 = scmp.lt.s32.totalorder %s2956_s16, 3 }
  0x1f   : > { %p3089_p11 = por %p294_p7, %p50_p0  ;;  %p3093_p12 = por %p300_p8, %p56_p3 }
  0x20   : > { %p3097_p13 = pnand %p1978_p9, %p307_p10  ;;  %s2958_s28 = smov [#allocation14]  }
  0x21   : > { %s3881_s25 = scalar_select %p3089_p11, 1, 0 }
  0x22   : > { %s3883_s26 = scalar_select %p3093_p12, 1, 0 }
  0x23   : > { %3882 = sst [smem:[#allocation29_spill]] %s3881_s25  ;;  %p2278_p1 = pneg %p3097_p13 }
  0x24   : > { %3884 = sst [smem:[#allocation30_spill]] %s3883_s26  ;;  %s319_s29 = sshll.u32 %s2958_s28, 4  ;;  %s320_s29 = int_to_ptr.vmem [resolvable:$true] %s319_s29 }
  0x25   : > { %s3885_s27 = scalar_select %p3097_p13, 1, 0 }
  0x26   : > { %p3105_p2 = pnand %p2278_p1, %p3853_p4  ;;  %s3852_s11 = sand.u32 1, %s2952_s15  }
  0x27   : > { %s3114_s12 = sshll.u32 %s3852_s11, 4  ;;  %s3887_s6 = sld [smem:[#allocation34_spill]] }
  0x28   : > { %s3886_s30 = scalar_select %p3105_p2, 1, 0 }
  0x29   : > { %p3859_p8 = pneg %p3105_p2 }
  0x2d   : > { %s2634_s21 = scalar_lea.hbm %s3887_s6, 3840 }
  0x2e   : > { %p2635_p7 = scmp.ne.s32.totalorder %s3887_s6, %s2634_s21  ;;  %p2641_p1 = scmp.lt.u32.totalorder %s2634_s21, %s3887_s6 }
  0x30   : > { %p2637_p9 = pnand %p3859_p8, %p2635_p7 }
  0x32   : > { %p2638_p10 = pneg %p2637_p9 }
  0x34   : > { %p2643_p0 = pnand %p2641_p1, %p2638_p10 }
  0x36   : > { %2646 = shalt.err (!%p2643_p0)
}
  0x37   : > { %s2647_s11 = scalar_lea.vmem %s320_s29, 3840  ;;  %p2655_p11 = scmp.lt.s32.totalorder %s320_s29, %s320_s29 }
  0x38   : > { %p2648_p4 = scmp.ne.s32.totalorder %s320_s29, %s2647_s11  ;;  %p2656_p6 = scmp.lt.s32.totalorder %s2647_s11, %s2647_s11 }
  0x3a   : > { %p2650_p3 = pnand %p2648_p4, %p3859_p8  ;;  %p2657_p13 = por %p2656_p6, %p2655_p11 }
  0x3c   : > { %p2651_p12 = pneg %p2650_p3 }
  0x3e   : > { %p2658_p5 = pnand %p2657_p13, %p2651_p12 }
  0x40   : > { %2661 = shalt.err (!%p2658_p5)
}
  0x41   : > { %s2959_s22 = smov 384   ;;  %s2960_s19 = smov 24  }
  0x42   : > { %2281 = dma.hbm_to_vmem [thread:$0]  (!%p3105_p2), %s3887_s6, 3840, %s320_s29, [#allocation13], %s2959_s22, %s2959_s22, %s2960_s19  }
  0x43   : > { %p3888_p4 = scmp.ne.s32.totalorder %s3879_s23, 0  ;;  %p3889_p0 = scmp.lt.s32.totalorder %s2956_s16, 2 }
  0x44   : > { %s3147_s20 = sshll.u32 %s2956_s16, 8  ;;  %s3150_s21 = sand.u32 1, %s2956_s16  }
  0x45   : > { %p3142_p3 = pnand %p3889_p0, %p3888_p4  ;;  %s3891_s1 = sld [smem:[#allocation32_spill]] }
  0x46   : > { %s375_s23 = scalar_lea.vmem [#allocation6], %s3114_s12 }
  0x47   : > { %s3890_s11 = scalar_select %p3142_p3, 1, 0 }
  0x48   : > { %s383_s29 = sshll.u32 %s375_s23, 4  ;;  %p3166_p6 = pneg %p3142_p3  ;;  %s3159_s29 = int_to_ptr.vmem [resolvable:$true] %s383_s29 }
  0x4a   : > { %s3892_s26 = scalar_select %p3166_p6, 1, 0 }
  0x4b   : > { %s3156_s10 = scalar_lea.hbm %s3891_s1, %s3147_s20  ;;  %s2667_s28 = scalar_lea.hbm %s3891_s1, 512 }
  0x4c   : > { %s2662_s19 = scalar_lea.hbm %s3156_s10, 256  ;;  %p2668_p13 = scmp.lt.u32.totalorder %s3156_s10, %s3891_s1 }
  0x4d   : > { %p2663_p5 = scmp.ne.s32.totalorder %s3156_s10, %s2662_s19  ;;  %p2669_p7 = scmp.lt.u32.totalorder %s2667_s28, %s2662_s19 }
  0x4e   : > { %p2671_p10 = scmp.lt.u32.totalorder %s2662_s19, %s3156_s10 }
  0x4f   : > { %p2665_p11 = pnand %p3166_p6, %p2663_p5  ;;  %p2670_p9 = por %p2669_p7, %p2668_p13 }
  0x51   : > { %p2666_p12 = pneg %p2665_p11  ;;  %p2672_p1 = por %p2671_p10, %p2670_p9 }
  0x53   : > { %p2673_p4 = pnand %p2672_p1, %p2666_p12 }
  0x55   : > { %2676 = shalt.err (!%p2673_p4)
}
  0x56   : > { %s2677_s22 = scalar_lea.vmem %s3159_s29, 256  ;;  %s2961_s13 = smov [#allocation6]  }
  0x57   : > { %p2678_p0 = scmp.ne.s32.totalorder %s3159_s29, %s2677_s22  ;;  %s2682_s18 = sshll.u32 %s2961_s13, 4  ;;  %s2683_s18 = int_to_ptr.vmem [resolvable:$false] %s2682_s18 }
  0x58   : > { %s2684_s6 = scalar_lea.vmem %s2683_s18, 512  ;;  %p2685_p8 = scmp.lt.s32.totalorder %s3159_s29, %s2683_s18 }
  0x59   : > { %p2680_p5 = pnand %p2678_p0, %p3166_p6  ;;  %p2686_p2 = scmp.lt.s32.totalorder %s2684_s6, %s2677_s22 }
  0x5b   : > { %p2681_p11 = pneg %p2680_p5  ;;  %p2687_p13 = por %p2686_p2, %p2685_p8 }
  0x5d   : > { %p2688_p7 = pnand %p2687_p13, %p2681_p11 }
  0x5f   : > { %2691 = shalt.err (!%p2688_p7)
}
  0x60   : > { %s3893_s19 = scalar_lea.sflag [#allocation7], %s3150_s21  ;;  %s3894_s3 = sld [smem:[#allocation33_spill]] }
  0x61   : > { %2291 = dma.hbm_to_vmem [thread:$0]  (!%p3142_p3), %s3156_s10, 256, %s3159_s29, %s3893_s19  }
  0x62   : > { %s413_s22 = scalar_lea.vmem [#allocation9], %s3114_s12  ;;  %s2962_s6 = smov [#allocation15]  }
  0x63   : > { %s421_s18 = sshll.u32 %s413_s22, 4  ;;  %s3200_s1 = sshll.u32 %s2962_s6, 4  ;;  %s3198_s18 = int_to_ptr.vmem [resolvable:$true] %s421_s18  ;;  %s333_s1 = int_to_ptr.vmem [resolvable:$true] %s3200_s1 }
  0x64   : > { %s3869_s16 = scalar_lea.sflag [#allocation10], %s3150_s21 }
  0x66   : > { %s3195_s13 = scalar_lea.hbm %s3894_s3, %s3147_s20  ;;  %s2697_s19 = scalar_lea.hbm %s3894_s3, 512 }
  0x67   : > { %s2692_s25 = scalar_lea.hbm %s3195_s13, 256  ;;  %p2698_p9 = scmp.lt.u32.totalorder %s3195_s13, %s3894_s3 }
  0x68   : > { %p2693_p2 = scmp.ne.s32.totalorder %s3195_s13, %s2692_s25  ;;  %p2699_p10 = scmp.lt.u32.totalorder %s2697_s19, %s2692_s25 }
  0x69   : > { %p2701_p4 = scmp.lt.u32.totalorder %s2692_s25, %s3195_s13 }
  0x6a   : > { %p2695_p8 = pnand %p2693_p2, %p3166_p6  ;;  %p2700_p1 = por %p2699_p10, %p2698_p9 }
  0x6c   : > { %p2696_p12 = pneg %p2695_p8  ;;  %p2702_p0 = por %p2701_p4, %p2700_p1 }
  0x6e   : > { %p2703_p5 = pnand %p2702_p0, %p2696_p12 }
  0x70   : > { %2706 = shalt.err (!%p2703_p5)
}
  0x71   : > { %s2707_s22 = scalar_lea.vmem %s3198_s18, 256  ;;  %s2963_s6 = smov [#allocation9]  }
  0x72   : > { %p2708_p11 = scmp.ne.s32.totalorder %s3198_s18, %s2707_s22  ;;  %s2712_s10 = sshll.u32 %s2963_s6, 4  ;;  %s2713_s10 = int_to_ptr.vmem [resolvable:$false] %s2712_s10 }
  0x73   : > { %s2714_s29 = scalar_lea.vmem %s2713_s10, 512  ;;  %p2715_p2 = scmp.lt.s32.totalorder %s3198_s18, %s2713_s10 }
  0x74   : > { %p2710_p13 = pnand %p2708_p11, %p3166_p6  ;;  %p2716_p8 = scmp.lt.s32.totalorder %s2714_s29, %s2707_s22 }
  0x76   : > { %p2711_p7 = pneg %p2710_p13  ;;  %p2717_p9 = por %p2716_p8, %p2715_p2 }
  0x78   : > { %p2718_p10 = pnand %p2717_p9, %p2711_p7 }
  0x7a   : > { %2721 = shalt.err (!%p2718_p10)
}
  0x7b   : > { %2297 = dma.hbm_to_vmem [thread:$0]  (!%p3142_p3), %s3195_s13, 256, %s3198_s18, %s3869_s16  }
  0x7c   : > { %s2722_s28 = scalar_lea.hbm %s3845_s7, 512  ;;  %p3895_p1 = scmp.ne.s32.totalorder %s3886_s30, 0 }
  0x7d   : > { %p2723_p12 = scmp.ne.s32.totalorder %s3845_s7, %s2722_s28  ;;  %p2729_p11 = scmp.lt.u32.totalorder %s2722_s28, %s3845_s7 }
  0x7e   : > { %p3896_p4 = pneg %p3895_p1 }
  0x80   : > { %p2725_p0 = pnand %p2723_p12, %p3896_p4 }
  0x82   : > { %p2726_p5 = pneg %p2725_p0 }
  0x84   : > { %p2731_p13 = pnand %p2729_p11, %p2726_p5 }
  0x86   : > { %2734 = shalt.err (!%p2731_p13)
}
  0x87   : > { %s2735_s13 = scalar_lea.vmem %s333_s1, 512  ;;  %p3897_p2 = pmov %p3896_p4 }
  0x88   : > { %p2736_p7 = scmp.ne.s32.totalorder %s333_s1, %s2735_s13  ;;  %p2743_p10 = scmp.lt.s32.totalorder %s333_s1, %s333_s1 }
  0x89   : > { %p2744_p3 = scmp.lt.s32.totalorder %s2735_s13, %s2735_s13 }
  0x8a   : > { %p2738_p8 = pnand %p2736_p7, %p3897_p2 }
  0x8b   : > { %p2745_p6 = por %p2744_p3, %p2743_p10 }
  0x8c   : > { %p2739_p9 = pneg %p2738_p8 }
  0x8e   : > { %p2746_p4 = pnand %p2745_p6, %p2739_p9 }
  0x90   : > { %2749 = shalt.err (!%p2746_p4)
}
  0x91   : > { %s2964_s18 = smov 256   ;;  %s2965_s29 = smov 16  }
  0x92   : > { %2284 = dma.hbm_to_vmem [thread:$0]  (!%p3895_p1), %s3845_s7, 512, %s333_s1, [#allocation16], %s2964_s18, %s2964_s18, %s2965_s29  }
  0x93   : > { %s3898_s0 = sld [smem:[#allocation31_spill]]  ;;  %s356_s22 = scalar_lea.vmem [#allocation3], %s3114_s12 }
  0x94   : > { %s364_s10 = sshll.u32 %s356_s22, 4  ;;  %s3260_s30 = scalar_lea.hbm %s3840_s2, %s3147_s20  ;;  %s3254_s10 = int_to_ptr.vmem [resolvable:$true] %s364_s10 }
  0x95   : > { %s3899_s25 = sand.u32 1, %s2952_s15   ;;  %p3900_p6 = scmp.ne.s32.totalorder %s3892_s26, 0 }
  0x96   : > { %s353_s1 = scalar_lea.sflag [#allocation4], %s3899_s25 }
  0x99   : > { %s3251_s6 = scalar_lea.hbm %s3898_s0, %s3147_s20  ;;  %s2755_s28 = scalar_lea.hbm %s3898_s0, 512 }
  0x9a   : > { %s2750_s18 = scalar_lea.hbm %s3251_s6, 256  ;;  %p2756_p0 = scmp.lt.u32.totalorder %s3251_s6, %s3898_s0 }
  0x9b   : > { %p2751_p3 = scmp.ne.s32.totalorder %s3251_s6, %s2750_s18  ;;  %p2757_p5 = scmp.lt.u32.totalorder %s2755_s28, %s2750_s18 }
  0x9c   : > { %p2759_p13 = scmp.lt.u32.totalorder %s2750_s18, %s3251_s6 }
  0x9d   : > { %p2753_p12 = pnand %p2751_p3, %p3900_p6  ;;  %p2758_p11 = por %p2757_p5, %p2756_p0 }
  0x9f   : > { %p2754_p1 = pneg %p2753_p12  ;;  %p2760_p7 = por %p2759_p13, %p2758_p11 }
  0xa1   : > { %p2761_p2 = pnand %p2760_p7, %p2754_p1 }
  0xa3   : > { %2764 = shalt.err (!%p2761_p2)
}
  0xa4   : > { %s2765_s16 = scalar_lea.vmem %s3254_s10, 256  ;;  %s2966_s13 = smov [#allocation3]  }
  0xa5   : > { %p2766_p8 = scmp.ne.s32.totalorder %s3254_s10, %s2765_s16  ;;  %s2770_s25 = sshll.u32 %s2966_s13, 4  ;;  %s2771_s25 = int_to_ptr.vmem [resolvable:$false] %s2770_s25 }
  0xa6   : > { %s2772_s29 = scalar_lea.vmem %s2771_s25, 512  ;;  %p2773_p4 = scmp.lt.s32.totalorder %s3254_s10, %s2771_s25 }
  0xa7   : > { %p2768_p9 = pnand %p2766_p8, %p3900_p6  ;;  %p2774_p3 = scmp.lt.s32.totalorder %s2772_s29, %s2765_s16 }
  0xa9   : > { %p2769_p10 = pneg %p2768_p9  ;;  %p2775_p12 = por %p2774_p3, %p2773_p4 }
  0xab   : > { %p2776_p0 = pnand %p2775_p12, %p2769_p10 }
  0xad   : > { %2779 = shalt.err (!%p2776_p0)
}
  0xae   : > { %p3901_p1 = scmp.ne.s32.totalorder %s3890_s11, 0  ;;  %s394_s18 = scalar_lea.vmem [#allocation8], %s3114_s12 }
  0xaf   : > { %s402_s19 = sshll.u32 %s394_s18, 4  ;;  %s3290_s22 = scalar_lea.hbm %s3842_s4, %s3147_s20  ;;  %s403_s19 = int_to_ptr.vmem [resolvable:$true] %s402_s19 }
  0xb0   : > { %2288 = dma.hbm_to_vmem [thread:$0]  (!%p3901_p1), %s3251_s6, 256, %s3254_s10, %s353_s1  }
  0xb1   : > { %s2780_s16 = scalar_lea.hbm %s3260_s30, 256  ;;  %s2785_s29 = scalar_lea.hbm %s3840_s2, 512 }
  0xb2   : > { %p2781_p5 = scmp.ne.s32.totalorder %s3260_s30, %s2780_s16  ;;  %p2786_p7 = scmp.lt.u32.totalorder %s3260_s30, %s3840_s2 }
  0xb3   : > { %p2787_p2 = scmp.lt.u32.totalorder %s2785_s29, %s2780_s16  ;;  %p2789_p9 = scmp.lt.u32.totalorder %s2780_s16, %s3260_s30 }
  0xb4   : > { %p2783_p11 = pnand %p2781_p5, %p3900_p6 }
  0xb5   : > { %p2788_p8 = por %p2787_p2, %p2786_p7 }
  0xb6   : > { %p2784_p13 = pneg %p2783_p11 }
  0xb7   : > { %p2790_p10 = por %p2789_p9, %p2788_p8 }
  0xb9   : > { %p2791_p4 = pnand %p2790_p10, %p2784_p13 }
  0xbb   : > { %2794 = shalt.err (!%p2791_p4)
}
  0xbc   : > { %s2795_s6 = scalar_lea.vmem %s403_s19, 256  ;;  %s2967_s10 = smov [#allocation8]  }
  0xbd   : > { %p2796_p3 = scmp.ne.s32.totalorder %s403_s19, %s2795_s6  ;;  %s2800_s1 = sshll.u32 %s2967_s10, 4  ;;  %s2801_s1 = int_to_ptr.vmem [resolvable:$false] %s2800_s1 }
  0xbe   : > { %s2802_s18 = scalar_lea.vmem %s2801_s1, 512  ;;  %p2803_p5 = scmp.lt.s32.totalorder %s403_s19, %s2801_s1 }
  0xbf   : > { %p2798_p12 = pnand %p2796_p3, %p3900_p6  ;;  %p2804_p11 = scmp.lt.s32.totalorder %s2802_s18, %s2795_s6 }
  0xc1   : > { %p2799_p0 = pneg %p2798_p12  ;;  %p2805_p1 = por %p2804_p11, %p2803_p5 }
  0xc3   : > { %p2806_p2 = pnand %p2805_p1, %p2799_p0 }
  0xc5   : > { %2809 = shalt.err (!%p2806_p2)
}
  0xc6   : > { %p3902_p7 = scmp.ne.s32.totalorder %s3890_s11, 0  ;;  %s3903_s0 = scalar_lea.sflag [#allocation7], %s3150_s21 }
  0xc7   : > { %s432_s3 = scalar_lea.vmem [#allocation11], %s3114_s12  ;;  %s2810_s23 = scalar_lea.hbm %s3290_s22, 256 }
  0xc8   : > { %2294 = dma.hbm_to_vmem [thread:$0]  (!%p3902_p7), %s3260_s30, 256, %s403_s19, %s3903_s0  }
  0xc9   : > { %s440_s28 = sshll.u32 %s432_s3, 4  ;;  %p2811_p13 = scmp.ne.s32.totalorder %s3290_s22, %s2810_s23  ;;  %s441_s28 = int_to_ptr.vmem [resolvable:$true] %s440_s28 }
  0xca   : > { %s2815_s25 = scalar_lea.hbm %s3842_s4, 512  ;;  %p2816_p9 = scmp.lt.u32.totalorder %s3290_s22, %s3842_s4 }
  0xcb   : > { %p2813_p1 = pnand %p2811_p13, %p3900_p6  ;;  %p2817_p10 = scmp.lt.u32.totalorder %s2815_s25, %s2810_s23 }
  0xcc   : > { %p2819_p3 = scmp.lt.u32.totalorder %s2810_s23, %s3290_s22 }
  0xcd   : > { %p2814_p8 = pneg %p2813_p1  ;;  %p2818_p4 = por %p2817_p10, %p2816_p9 }
  0xcf   : > { %p2820_p12 = por %p2819_p3, %p2818_p4 }
  0xd1   : > { %p2821_p0 = pnand %p2820_p12, %p2814_p8 }
  0xd3   : > { %2824 = shalt.err (!%p2821_p0)
}
  0xd4   : > { %s2825_s30 = scalar_lea.vmem %s441_s28, 256  ;;  %s2968_s19 = smov [#allocation11]  }
  0xd5   : > { %p2826_p5 = scmp.ne.s32.totalorder %s441_s28, %s2825_s30  ;;  %s2830_s10 = sshll.u32 %s2968_s19, 4  ;;  %s2831_s10 = int_to_ptr.vmem [resolvable:$false] %s2830_s10 }
  0xd6   : > { %s2832_s1 = scalar_lea.vmem %s2831_s10, 512  ;;  %p2833_p13 = scmp.lt.s32.totalorder %s441_s28, %s2831_s10 }
  0xd7   : > { %p2828_p11 = pnand %p2826_p5, %p3900_p6  ;;  %p2834_p1 = scmp.lt.s32.totalorder %s2832_s1, %s2825_s30 }
  0xd9   : > { %p2829_p2 = pneg %p2828_p11  ;;  %p2835_p7 = por %p2834_p1, %p2833_p13 }
  0xdb   : > { %p2836_p9 = pnand %p2835_p7, %p2829_p2 }
  0xdd   : > { %2839 = shalt.err (!%p2836_p9)
}
  0xde   : > { %p3904_p10 = scmp.ne.s32.totalorder %s3890_s11, 0  ;;  %s3905_s18 = scalar_lea.sflag [#allocation10], %s3150_s21 }
  0xdf   : > { %s3335_s23 = scalar_lea.hbm %s3843_s5, %s3147_s20  ;;  %s451_s16 = scalar_lea.vmem [#allocation12], %s3114_s12 }
  0xe0   : > { %2300 = dma.hbm_to_vmem [thread:$0]  (!%p3904_p10), %s3290_s22, 256, %s441_s28, %s3905_s18  }
  0xe1   : > { %s459_s13 = sshll.u32 %s451_s16, 4  ;;  %s448_s25 = scalar_lea.sflag [#allocation13], %s3150_s21  ;;  %s460_s13 = int_to_ptr.vmem [resolvable:$true] %s459_s13 }
  0xe2   : > { %s2840_s29 = scalar_lea.hbm %s3335_s23, 256  ;;  %s2845_s28 = scalar_lea.hbm %s3843_s5, 512 }
  0xe3   : > { %p2841_p7 = scmp.ne.s32.totalorder %s3335_s23, %s2840_s29  ;;  %p2846_p3 = scmp.lt.u32.totalorder %s3335_s23, %s3843_s5 }
  0xe4   : > { %p2847_p12 = scmp.lt.u32.totalorder %s2845_s28, %s2840_s29  ;;  %p2849_p5 = scmp.lt.u32.totalorder %s2840_s29, %s3335_s23 }
  0xe5   : > { %p2843_p8 = pnand %p2841_p7, %p3900_p6 }
  0xe6   : > { %p2848_p0 = por %p2847_p12, %p2846_p3 }
  0xe7   : > { %p2844_p4 = pneg %p2843_p8 }
  0xe8   : > { %p2850_p11 = por %p2849_p5, %p2848_p0 }
  0xea   : > { %p2851_p2 = pnand %p2850_p11, %p2844_p4 }
  0xec   : > { %2854 = shalt.err (!%p2851_p2)
}
  0xed   : > { %s2855_s12 = scalar_lea.vmem %s460_s13, 256  ;;  %s2969_s21 = smov [#allocation12]  }
  0xee   : > { %p2856_p13 = scmp.ne.s32.totalorder %s460_s13, %s2855_s12  ;;  %s2860_s19 = sshll.u32 %s2969_s21, 4  ;;  %s2861_s19 = int_to_ptr.vmem [resolvable:$false] %s2860_s19 }
  0xef   : > { %s2862_s10 = scalar_lea.vmem %s2861_s19, 512  ;;  %p2863_p7 = scmp.lt.s32.totalorder %s460_s13, %s2861_s19 }
  0xf0   : > { %p2858_p1 = pnand %p2856_p13, %p3900_p6  ;;  %p2864_p8 = scmp.lt.s32.totalorder %s2862_s10, %s2855_s12 }
  0xf2   : > { %p2859_p9 = pneg %p2858_p1  ;;  %p2865_p10 = por %p2864_p8, %p2863_p7 }
  0xf4   : > { %p2866_p3 = pnand %p2865_p10, %p2859_p9 }
  0xf6   : > { %2869 = shalt.err (!%p2866_p3)
}
  0xf7   : > { %p3906_p12 = scmp.ne.s32.totalorder %s3890_s11, 0  ;;  %p3907_p4 = scmp.ne.s32.totalorder %s3885_s27, 0 }
  0xf8   : > { %s3359_s26 = sand.u32 (!%p3907_p4), 1, %s2948_s14   ;;  %p3908_p6 = scmp.ne.s32.totalorder (!%p3907_p4), %s3880_s24, 0 }
  0xf9   : > { %2303 = dma.hbm_to_vmem [thread:$0]  (!%p3906_p12), %s3335_s23, 256, %s460_s13, %s448_s25  }
  0xfa   : > { %468 = sbr.rel (%p3907_p4) target bundleno = 1042 (0x412), region = 60  ;;  %s3362_s1 = sshll.u32 (!%p3907_p4), %s3359_s26, 4 }
  0xfb   : > { %s471_s18 = scalar_lea.sflag (!%p3907_p4), [#allocation4], %s3359_s26  ;;  %s474_s0 = scalar_lea.vmem (!%p3907_p4), [#allocation3], %s3362_s1 }
 0x101   : > { %2915 = dma.done.wait (%p3908_p6), %s471_s18, 256  }
 0x102   : > { %2917 = vsyncadd (%p3908_p6), %s471_s18, 4294967040  ;;  %s479_s27 = sand.u32 1, %s3058_s17   ;;  %s3372_s3 = scalar_lea.vmem [#allocation6], %s3362_s1 }
 0x103   : > { %s480_s11 = scalar_lea.sflag [#allocation7], %s479_s27 }
 0x104   : > { %2919 = dma.done.wait (%p3908_p6), %s480_s11, 512  }
 0x105   : > { %2921 = vsyncadd (%p3908_p6), %s480_s11, 4294966784  ;;  %s492_s23 = scalar_lea.vmem [#allocation8], %s3362_s1  ;;  %s498_s16 = scalar_lea.sflag [#allocation10], %s479_s27 }
 0x106   : > { %s501_s13 = scalar_lea.vmem [#allocation9], %s3362_s1 }
 0x107   : > { %2923 = dma.done.wait (%p3908_p6), %s498_s16, 512  }
 0x108   : > { %2925 = vsyncadd (%p3908_p6), %s498_s16, 4294966784  ;;  %s510_s25 = scalar_lea.vmem [#allocation11], %s3362_s1  ;;  %s516_s29 = scalar_lea.sflag [#allocation13], %s479_s27 }
 0x109   : > { %s519_s6 = scalar_lea.vmem [#allocation12], %s3362_s1 }
 0x10a   : > { %2927 = dma.done.wait (%p3908_p6), %s516_s29, 256  }
 0x10b   : > { %2929 = vsyncadd (%p3908_p6), %s516_s29, 4294967040  ;;  %p3909_p10 = scmp.eq.s32.totalorder %s3058_s17, 0 }
 0x10d   : > { %2931 = dma.done.wait (%p3909_p10), [#allocation13], 3840   ;;  %p3910_p0 = pmov %p3909_p10 }
 0x10f   : > { %2933 = vsyncadd (%p3910_p0), [#allocation13], 4294963456  ;;  %p3911_p5 = pmov %p3910_p0 }
 0x110   : > { %p3912_p11 = pmov %p3910_p0 }
 0x111   : > { %2935 = dma.done.wait (%p3911_p5), [#allocation16], 512  }
 0x112   : > { %2937 = vsyncadd (%p3912_p11), [#allocation16], 4294966784  ;;  %v3398_v0 = vld [vmem:[%s492_s23] sm:$0xff]  ;;  %v3400_v1 = vld [vmem:[%s492_s23 + $0x8] sm:$0xff]  ;;  %s2970_s24 = smov 17   ;;  %s2971_s22 = smov 16   ;;  %v599_v31 = vlaneseq }
 0x113   : > { %v3402_v2 = vld [vmem:[%s474_s0] sm:$0xff]  ;;  %v2373_v3 = vpack.i.bf16 %v3400_v1, %v3398_v0  ;;  %v3406_v4 = vld [vmem:[%s474_s0 + $0x8] sm:$0xff]  ;;  %s2972_s28 = smov 15   ;;  %s2973_s30 = smov 1   ;;  %v2978_v30 = vmov 0.0   ;;  %vm656_vm0 = vcmask 138240  }
 0x114   : > { %v3408_v5 = vld [vmem:[%s501_s13] sm:$0xff]  ;;  %v3410_v6 = vld [vmem:[%s501_s13 + $0x8] sm:$0xff]  ;;  %v2363_v7 = vpack.i.bf16 %v3406_v4, %v3402_v2  ;;  %s2974_s20 = smov 113   ;;  %s2975_s12 = smov 112   ;;  %v2493_v24 = vpack.i.bf16 %v3402_v2, %v3406_v4  ;;  %1478 = vmatprep.mubr.f32.mxu1 %v2978_v30  ;;  %v3471_v32 = vand.u32 127, %v599_v31  ;;  %vm729_vm3 = vcmask 130048  }
 0x115   : > { %v3415_v8 = vld [vmem:[%s3372_s3] sm:$0xff]  ;;  %v3418_v9 = vld [vmem:[%s3372_s3 + $0x8] sm:$0xff]  ;;  %2374 = vrot.lane.b32.xlu1 %v2373_v3, %s2970_s24  ;;  %v2378_v10 = vpack.i.bf16 %v3410_v6, %v3408_v5  ;;  %v2538_v15 = vpack.i.bf16 %v3410_v6, %v3400_v1  ;;  %v2543_v16 = vpack.i.bf16 %v3408_v5, %v3398_v0  ;;  %v2170_v21 = vpack.c.bf16 %v3410_v6, %v3400_v1  ;;  %s2976_s21 = smov 127   ;;  %s2977_s19 = smov 111   ;;  %vm3519_vm6 = vmneg %vm729_vm3 }
 0x116   : > { %2364 = vrot.lane.b32.xlu0 %v2363_v7, %s2970_s24  ;;  %v2368_v11 = vpack.i.bf16 %v3418_v9, %v3415_v8  ;;  %v3424_v12 = vld [vmem:[%s510_s25] sm:$0xff]  ;;  %v3426_v13 = vld [vmem:[%s510_s25 + $0x8] sm:$0xff]  ;;  %v2548_v17 = vpack.i.bf16 %v3418_v9, %v3406_v4  ;;  %v2553_v18 = vpack.i.bf16 %v3415_v8, %v3402_v2  ;;  %v2166_v19 = vpack.c.bf16 %v3418_v9, %v3406_v4  ;;  %vm2129_vm11 = vmpackc.low %vm3519_vm6, %vm3519_vm6  ;;  %s2009_s10 = sshll.u32 %s3359_s26, 6  ;;  %s3925_s16 = sld [smem:[#allocation29_spill]] }
 0x117   : > { %v2383_v14 = vpack.i.bf16 %v3426_v13, %v3424_v12  ;;  %v2168_v20 = vpack.c.bf16 %v3415_v8, %v3402_v2  ;;  %v2172_v22 = vpack.c.bf16 %v3408_v5, %v3398_v0  ;;  %v2473_v23 = vpack.i.bf16 %v3424_v12, %v3426_v13  ;;  %v1139_v29 = vld [vmem:[#allocation14 + $0x8] sm:$0xff]  ;;  %v1138_v57 = vld [vmem:[#allocation14] sm:$0xff]  ;;  %s3760_s1 = scalar_lea.vmem [#allocation17], %s2009_s10  ;;  %s2032_s13 = sshll.u32 %s3058_s17, 10 }
 0x118   : > { %v2508_v25 = vpack.i.bf16 %v3400_v1, %v3418_v9  ;;  %v2513_v26 = vpack.i.bf16 %v3398_v0, %v3415_v8  ;;  %v2528_v27 = vpack.i.bf16 %v3426_v13, %v3410_v6  ;;  %v2533_v28 = vpack.i.bf16 %v3424_v12, %v3408_v5  ;;  %1353 = vmatprep.mubr.f32.mxu0 %v1139_v29  ;;  %v1146_v63 = vld [vmem:[#allocation14 + $0x40] sm:$0xff]  ;;  %s1776_s25 = sshll.u32 %s3760_s1, 4  ;;  %s3791_s25 = int_to_ptr.vmem [resolvable:$true] %s1776_s25 }
 0x119   : > { %2379 = vrot.lane.b32.xlu1 %v2378_v10, %s2970_s24  ;;  %v3474_v33 = vadd.s32 128, %v3471_v32  ;;  %v606_v35 = vand.u32 15, %v3471_v32  ;;  %vm2979_vm7 = vmmov 1   ;;  %vm780_vm10 = vcmask 121856   ;;  %s2870_s17 = scalar_lea.vmem %s3791_s25, 1024 }
 0x11a   : > { %2369 = vrot.lane.b32.xlu0 %v2368_v11, %s2970_s24  ;;  %vm853_vm15 = vcmask 7168   ;;  %p2871_p2 = scmp.ne.s32.totalorder %s3791_s25, %s2870_s17 }
 0x11b   : > { %v613_v34 = vand.u32 15, %v3474_v33  ;;  %v3484_v39 = vadd.s32 4294967295, %v606_v35 }
 0x11c   : > { %p3927_p13 = scmp.ne.s32.totalorder %s3925_s16, 0 }
 0x11d   : > { %2389 = vrot.lane.b32.xlu1 %v2363_v7, %s2971_s22  ;;  %v3480_v38 = vadd.s32 4294967295, %v613_v34  ;;  %vm679_vm2 = vcmp.ge.s32.totalorder %v3484_v39, 0 }
 0x11e   : > { %2384 = vrot.lane.b32.xlu0 %v2383_v14, %s2970_s24  ;;  %vm3504_vm5 = vmpackc.low %vm679_vm2, %vm679_vm2  ;;  %s3926_s24 = sld [smem:[#allocation35_spill]]  ;;  %p2872_p1 = pnand %p2871_p2, %p3927_p13 }
 0x11f   : > { %vm680_vm1 = vcmp.ge.s32.totalorder %v3480_v38, 0  ;;  %vm2124_vm9 = vmpackc.low %vm3519_vm6, %vm679_vm2 }
 0x120   : > { %vm3497_vm4 = vmpackc.low %vm680_vm1, %vm680_vm1  ;;  %p2873_p9 = pneg %p2872_p1 }
 0x121   : > { %2399 = vrot.lane.b32.xlu1 %v2373_v3, %s2971_s22  ;;  %vm2121_vm8 = vmpackc.low %vm2979_vm7, %vm680_vm1 }
 0x122   : > { %2394 = vrot.lane.b32.xlu0 %v2368_v11, %s2971_s22 }
 0x125   : > { %2409 = vrot.lane.b32.xlu1 %v2383_v14, %s2971_s22 }
 0x126   : > { %2404 = vrot.lane.b32.xlu0 %v2378_v10, %s2971_s22 }
 0x129   : > { %2419 = vrot.lane.b32.xlu1 %v2368_v11, %s2972_s28 }
 0x12a   : > { %2414 = vrot.lane.b32.xlu0 %v2363_v7, %s2972_s28 }
 0x12d   : > { %2429 = vrot.lane.b32.xlu1 %v2378_v10, %s2972_s28 }
 0x12e   : > { %2424 = vrot.lane.b32.xlu0 %v2373_v3, %s2972_s28 }
 0x131   : > { %2439 = vrot.lane.b32.xlu1 %v2363_v7, %s2973_s30 }
 0x132   : > { %2434 = vrot.lane.b32.xlu0 %v2383_v14, %s2972_s28  ;;  %s3789_s28 = scalar_lea.hbm %s3926_s24, %s2032_s13 }
 0x135   : > { %2449 = vrot.lane.b32.xlu1 %v2373_v3, %s2973_s30 }
 0x136   : > { %2444 = vrot.lane.b32.xlu0 %v2368_v11, %s2973_s30 }
 0x139   : > { %2459 = vrot.lane.b32.xlu1 %v2383_v14, %s2973_s30 }
 0x13a   : > { %2454 = vrot.lane.b32.xlu0 %v2378_v10, %s2973_s30  ;;  %s1763_s30 = scalar_lea.sflag [#allocation5], %s3359_s26 }
 0x13d   : > { %2469 = vrot.lane.b32.xlu1 %v2543_v16, %s2974_s20 }
 0x13e   : > { %2464 = vrot.lane.b32.xlu0 %v2538_v15, %s2974_s20 }
 0x141   : > { %2479 = vrot.lane.b32.xlu1 %v2363_v7, %s2975_s12 }
 0x142   : > { %2474 = vrot.lane.b32.xlu0 %v2473_v23, %s2974_s20 }
 0x145   : > { %2489 = vrot.lane.b32.xlu1 %v2373_v3, %s2975_s12 }
 0x146   : > { %2484 = vrot.lane.b32.xlu0 %v2368_v11, %s2975_s12 }
 0x149   : > { %2499 = vrot.lane.b32.xlu1 %v2378_v10, %s2975_s12 }
 0x14a   : > { %2494 = vrot.lane.b32.xlu0 %v2493_v24, %s2976_s21 }
 0x14d   : > { %2509 = vrot.lane.b32.xlu1 %v2508_v25, %s2976_s21 }
 0x14e   : > { %2504 = vrot.lane.b32.xlu0 %v2383_v14, %s2975_s12 }
 0x151   : > { %2519 = vrot.lane.b32.xlu1 %v2548_v17, %s2977_s19 }
 0x152   : > { %2514 = vrot.lane.b32.xlu0 %v2513_v26, %s2976_s21 }
 0x155   : > { %2529 = vrot.lane.b32.xlu1 %v2528_v27, %s2976_s21 }
 0x156   : > { %2524 = vrot.lane.b32.xlu0 %v2553_v18, %s2977_s19 }
 0x159   : > { %2539 = vrot.lane.b32.xlu1 %v2538_v15, %s2977_s19 }
 0x15a   : > { %2534 = vrot.lane.b32.xlu0 %v2533_v28, %s2976_s21 }
 0x15d   : > { %2549 = vrot.lane.b32.xlu1 %v2548_v17, %s2974_s20 }
 0x15e   : > { %2544 = vrot.lane.b32.xlu0 %v2543_v16, %s2977_s19 }
 0x161   : > { %1095 = vrot.lane.b32.xlu1 %v3426_v13, %s2977_s19 }
 0x162   : > { %2554 = vrot.lane.b32.xlu0 %v2553_v18, %s2974_s20  ;;  %s2980_s20 = smov [#allocation17]  }
 0x163   : > { %s2874_s12 = sshll.u32 %s2980_s20, 4  ;;  %s2875_s12 = int_to_ptr.vmem [resolvable:$false] %s2874_s12 }
 0x164   : > { %s2876_s21 = scalar_lea.vmem %s2875_s12, 2048  ;;  %p2877_p7 = scmp.lt.s32.totalorder %s3791_s25, %s2875_s12 }
 0x165   : > { %p2878_p8 = scmp.lt.s32.totalorder %s2876_s21, %s2870_s17 }
 0x166   : > { %1093 = vrot.lane.b32.xlu0 %v3424_v12, %s2977_s19 }
 0x167   : > { %p2879_p3 = por %p2878_p8, %p2877_p7 }
 0x169   : > { %p2880_p12 = pnand %p2879_p3, %p2873_p9 }
 0x187   : > { %v2375_v36 = vpop.permute.xlu1 %2374 }
 0x188   : > { %v2365_v37 = vpop.permute.xlu0 %2364  ;;  %v2377_v40 = vunpack.i.h.bf16 %v2375_v36  ;;  %v2376_v41 = vunpack.i.l.bf16 %v2375_v36 }
 0x189   : > { %v2366_v42 = vunpack.i.l.bf16 %v2365_v37  ;;  %v2367_v43 = vunpack.i.h.bf16 %v2365_v37 }
 0x18a   : > { %v659_v50 = vsel %vm656_vm0, %v2376_v41, %v2377_v40  ;;  %v674_v10 = vsel %vm656_vm0, 0.0, %v2376_v41 }
 0x18b   : > { %v2380_v44 = vpop.permute.xlu1 %2379  ;;  %v672_v51 = vsel %vm656_vm0, 0.0, %v2366_v42  ;;  %v657_v55 = vsel %vm656_vm0, %v2366_v42, %v2367_v43 }
 0x18c   : > { %v2382_v45 = vunpack.i.h.bf16 %v2380_v44  ;;  %v2381_v46 = vunpack.i.l.bf16 %v2380_v44  ;;  %v2370_v47 = vpop.permute.xlu0 %2369 }
 0x18d   : > { %v2372_v48 = vunpack.i.h.bf16 %v2370_v47  ;;  %v2371_v49 = vunpack.i.l.bf16 %v2370_v47 }
 0x18e   : > { %v660_v52 = vsel %vm656_vm0, %v2381_v46, %v2382_v45  ;;  %v675_v11 = vsel %vm656_vm0, 0.0, %v2381_v46 }
 0x18f   : > { %v673_v53 = vsel %vm656_vm0, 0.0, %v2371_v49  ;;  %v2390_v54 = vpop.permute.xlu1 %2389  ;;  %v658_v56 = vsel %vm656_vm0, %v2371_v49, %v2372_v48  ;;  %v2114_v14 = vpack.c.bf16 %v660_v52, %v659_v50  ;;  %v2117_v26 = vpack.c.bf16 %v675_v11, %v674_v10 }
 0x190   : > { %v2392_v58 = vunpack.i.h.bf16 %v2390_v54  ;;  %v2391_v59 = vunpack.i.l.bf16 %v2390_v54  ;;  %v2385_v60 = vpop.permute.xlu0 %2384  ;;  %v2108_v61 = vpack.c.bf16 %v658_v56, %v657_v55  ;;  %v2111_v62 = vpack.c.bf16 %v673_v53, %v672_v51 }
 0x191   : > { %v2387_v3 = vunpack.i.h.bf16 %v2385_v60  ;;  %v2386_v7 = vunpack.i.l.bf16 %v2385_v60  ;;  %v3537_v48 = vadd.s32 1, %v613_v34  ;;  %v3546_v34 = vadd.s32 1, %v606_v35 }
 0x192   : > { %2110 = vmatprep.subr.msk.bf16.mxu0 %vm3497_vm4, %v2108_v61  ;;  %v730_v15 = vsel %vm729_vm3, %v2391_v59, %v2392_v58 }
 0x193   : > { %v661_v16 = vsel %vm656_vm0, %v2386_v7, %v2387_v3  ;;  %2113 = vmatpush1.bf16.msk.msra.mxu0 %vm3504_vm5, %v2111_v62  ;;  %v2400_v17 = vpop.permute.xlu1 %2399  ;;  %v676_v29 = vsel %vm656_vm0, 0.0, %v2386_v7  ;;  %vm806_vm12 = vcmp.lt.s32.totalorder %v3537_v48, 16  ;;  %vm805_vm14 = vcmp.lt.s32.totalorder %v3546_v34, 16  ;;  %v1143_v48 = vld [vmem:[#allocation14 + $0x28] sm:$0xff]  ;;  %v1144_v34 = vld [vmem:[#allocation14 + $0x30] sm:$0xff] }
 0x194   : > { %v2402_v18 = vunpack.i.h.bf16 %v2400_v17  ;;  %v2401_v23 = vunpack.i.l.bf16 %v2400_v17  ;;  %v2395_v24 = vpop.permute.xlu0 %2394  ;;  %2116 = vmatprep.subr.msk.bf16.mxu0 %vm3497_vm4, %v2114_v14  ;;  %v2120_v31 = vpack.c.bf16 %v730_v15, %v661_v16  ;;  %v2123_v44 = vpack.c.bf16 %v2391_v59, %v676_v29  ;;  %vm3559_vm13 = vmpackc.low %vm806_vm12, %vm806_vm12 }
 0x195   : > { %v2397_v27 = vunpack.i.h.bf16 %v2395_v24  ;;  %v2396_v28 = vunpack.i.l.bf16 %v2395_v24  ;;  %vm3578_vm0 = vmpackc.low %vm805_vm14, %vm805_vm14 }
 0x196   : > { %v732_v40 = vsel %vm729_vm3, %v2401_v23, %v2402_v18  ;;  %vm2149_vm6 = vmpackc.low %vm680_vm1, %vm806_vm12 }
 0x197   : > { %2119 = vmatpush1.bf16.msk.msra.mxu0 %vm3504_vm5, %v2117_v26  ;;  %v2410_v36 = vpop.permute.xlu1 %2409  ;;  %v731_v37 = vsel %vm729_vm3, %v2396_v28, %v2397_v27  ;;  %v2128_v55 = vpack.c.bf16 %v2401_v23, %v2396_v28  ;;  %v1142_v28 = vld [vmem:[#allocation14 + $0x20] sm:$0xff] }
 0x198   : > { %v2412_v41 = vunpack.i.h.bf16 %v2410_v36  ;;  %v2411_v42 = vunpack.i.l.bf16 %v2410_v36  ;;  %v2405_v43 = vpop.permute.xlu0 %2404  ;;  %2122 = vmatprep.subr.msk.bf16.mxu0 %vm2121_vm8, %v2120_v31  ;;  %v2126_v47 = vpack.c.bf16 %v732_v40, %v731_v37  ;;  %vm2152_vm8 = vmpackc.low %vm679_vm2, %vm805_vm14 }
 0x199   : > { %v2407_v45 = vunpack.i.h.bf16 %v2405_v43  ;;  %v2406_v46 = vunpack.i.l.bf16 %v2405_v43 }
 0x19a   : > { %v734_v51 = vsel %vm729_vm3, %v2411_v42, %v2412_v41 }
 0x19b   : > { %2125 = vmatpush1.bf16.msk.msra.mxu0 %vm2124_vm9, %v2123_v44  ;;  %v2420_v49 = vpop.permute.xlu1 %2419  ;;  %v733_v50 = vsel %vm729_vm3, %v2406_v46, %v2407_v45  ;;  %v2133_v32 = vpack.c.bf16 %v2411_v42, %v2406_v46  ;;  %vm985_vm9 = vcmask 924672  }
 0x19c   : > { %v2422_v52 = vunpack.i.h.bf16 %v2420_v49  ;;  %v2421_v53 = vunpack.i.l.bf16 %v2420_v49  ;;  %v2415_v54 = vpop.permute.xlu0 %2414  ;;  %2127 = vmatprep.subr.bf16.mxu0 %v2126_v47  ;;  %v2131_v58 = vpack.c.bf16 %v734_v51, %v733_v50 }
 0x19d   : > { %v2417_v56 = vunpack.i.h.bf16 %v2415_v54  ;;  %v2416_v33 = vunpack.i.l.bf16 %v2415_v54 }
 0x19e   : > { %v782_v59 = vsel %vm780_vm10, %v2421_v53, %v2422_v52  ;;  %v797_v14 = vsel %vm780_vm10, 0.0, %v2421_v53 }
 0x19f   : > { %v781_v60 = vsel %vm780_vm10, %v2416_v33, %v2417_v56  ;;  %2130 = vmatpush1.bf16.msk.msra.mxu0 %vm2129_vm11, %v2128_v55  ;;  %v2430_v61 = vpop.permute.xlu1 %2429  ;;  %v796_v15 = vsel %vm780_vm10, 0.0, %v2416_v33 }
 0x1a0   : > { %v2432_v62 = vunpack.i.h.bf16 %v2430_v61  ;;  %v2431_v3 = vunpack.i.l.bf16 %v2430_v61  ;;  %v2425_v7 = vpop.permute.xlu0 %2424  ;;  %2132 = vmatprep.subr.bf16.mxu0 %v2131_v58  ;;  %v2136_v16 = vpack.c.bf16 %v782_v59, %v781_v60  ;;  %v2139_v29 = vpack.c.bf16 %v797_v14, %v796_v15 }
 0x1a1   : > { %v2427_v35 = vunpack.i.h.bf16 %v2425_v7  ;;  %v2426_v10 = vunpack.i.l.bf16 %v2425_v7 }
 0x1a2   : > { %v784_v17 = vsel %vm780_vm10, %v2431_v3, %v2432_v62  ;;  %v799_v36 = vsel %vm780_vm10, 0.0, %v2431_v3 }
 0x1a3   : > { %v783_v18 = vsel %vm780_vm10, %v2426_v10, %v2427_v35  ;;  %2135 = vmatpush1.bf16.msk.msra.mxu0 %vm2129_vm11, %v2133_v32  ;;  %v2440_v23 = vpop.permute.xlu1 %2439  ;;  %v798_v37 = vsel %vm780_vm10, 0.0, %v2426_v10 }
 0x1a4   : > { %v2442_v24 = vunpack.i.h.bf16 %v2440_v23  ;;  %v2441_v26 = vunpack.i.l.bf16 %v2440_v23  ;;  %v2435_v27 = vpop.permute.xlu0 %2434  ;;  %2138 = vmatprep.subr.msk.bf16.mxu0 %vm3559_vm13, %v2136_v16  ;;  %v2142_v40 = vpack.c.bf16 %v784_v17, %v783_v18  ;;  %v2145_v47 = vpack.c.bf16 %v799_v36, %v798_v37 }
 0x1a5   : > { %v2437_v31 = vunpack.i.h.bf16 %v2435_v27  ;;  %v2436_v25 = vunpack.i.l.bf16 %v2435_v27 }
 0x1a6   : > { %v854_v41 = vsel %vm853_vm15, %v2441_v26, %v2442_v24  ;;  %v869_v51 = vsel %vm853_vm15, 0.0, %v2441_v26 }
 0x1a7   : > { %v785_v42 = vsel %vm780_vm10, %v2436_v25, %v2437_v31  ;;  %2141 = vmatpush1.bf16.msk.msra.mxu0 %vm3578_vm0, %v2139_v29  ;;  %v2450_v43 = vpop.permute.xlu1 %2449  ;;  %v800_v52 = vsel %vm780_vm10, 0.0, %v2436_v25  ;;  %vm1046_vm10 = vcmask 916480  }
 0x1a8   : > { %v2452_v44 = vunpack.i.h.bf16 %v2450_v43  ;;  %v2451_v45 = vunpack.i.l.bf16 %v2450_v43  ;;  %v2445_v46 = vpop.permute.xlu0 %2444  ;;  %2144 = vmatprep.subr.msk.bf16.mxu0 %vm3559_vm13, %v2142_v40  ;;  %v2148_v53 = vpack.c.bf16 %v854_v41, %v785_v42  ;;  %v2151_v60 = vpack.c.bf16 %v869_v51, %v800_v52  ;;  %vm2205_vm11 = vmpackc.low %vm1046_vm10, %vm680_vm1 }
 0x1a9   : > { %v2447_v49 = vunpack.i.h.bf16 %v2445_v46  ;;  %v2446_v50 = vunpack.i.l.bf16 %v2445_v46  ;;  %vm924_vm1 = vcmask 1039360  }
 0x1aa   : > { %v856_v54 = vsel %vm853_vm15, %v2451_v45, %v2452_v44  ;;  %v871_v3 = vsel %vm853_vm15, 0.0, %v2451_v45 }
 0x1ab   : > { %v855_v55 = vsel %vm853_vm15, %v2446_v50, %v2447_v49  ;;  %2147 = vmatpush1.bf16.msk.msra.mxu0 %vm3578_vm0, %v2145_v47  ;;  %v2460_v56 = vpop.permute.xlu1 %2459  ;;  %v870_v7 = vsel %vm853_vm15, 0.0, %v2446_v50 }
 0x1ac   : > { %v2462_v33 = vunpack.i.h.bf16 %v2460_v56  ;;  %v2461_v58 = vunpack.i.l.bf16 %v2460_v56  ;;  %v2455_v59 = vpop.permute.xlu0 %2454  ;;  %2150 = vmatprep.subr.msk.bf16.mxu0 %vm2149_vm6, %v2148_v53  ;;  %v2154_v32 = vpack.c.bf16 %v856_v54, %v855_v55  ;;  %v2157_v18 = vpack.c.bf16 %v871_v3, %v870_v7  ;;  %vm3640_vm6 = vmpackc.low %vm1046_vm10, %vm1046_vm10 }
 0x1ad   : > { %v2457_v61 = vunpack.i.h.bf16 %v2455_v59  ;;  %v2456_v62 = vunpack.i.l.bf16 %v2455_v59 }
 0x1ae   : > { %v858_v35 = vsel %vm853_vm15, %v2461_v58, %v2462_v33  ;;  %v873_v26 = vsel %vm853_vm15, 0.0, %v2461_v58 }
 0x1af   : > { %v857_v10 = vsel %vm853_vm15, %v2456_v62, %v2457_v61  ;;  %2153 = vmatpush1.bf16.msk.msra.mxu0 %vm2152_vm8, %v2151_v60  ;;  %v2470_v14 = vpop.permute.xlu1 %2469  ;;  %v872_v27 = vsel %vm853_vm15, 0.0, %v2456_v62  ;;  %vm2208_vm15 = vmpackc.low %vm2979_vm7, %vm679_vm2 }
 0x1b0   : > { %v2472_v15 = vunpack.i.h.bf16 %v2470_v14  ;;  %v2471_v16 = vunpack.i.l.bf16 %v2470_v14  ;;  %v2465_v17 = vpop.permute.xlu0 %2464  ;;  %2156 = vmatprep.subr.msk.bf16.mxu0 %vm3497_vm4, %v2154_v32  ;;  %v2160_v29 = vpack.c.bf16 %v858_v35, %v857_v10  ;;  %v2163_v46 = vpack.c.bf16 %v873_v26, %v872_v27  ;;  %vm2175_vm2 = vmpackc.low %vm806_vm12, %vm2979_vm7 }
 0x1b1   : > { %v2467_v23 = vunpack.i.h.bf16 %v2465_v17  ;;  %v2466_v24 = vunpack.i.l.bf16 %v2465_v17  ;;  %vm2178_vm8 = vmpackc.low %vm805_vm14, %vm2979_vm7  ;;  %vm1258_vm7 = vcmask 850944  }
 0x1b3   : > { %2159 = vmatpush1.bf16.msk.msra.mxu0 %vm3504_vm5, %v2157_v18  ;;  %v2480_v31 = vpop.permute.xlu1 %2479  ;;  %v1003_v25 = vsel %vm985_vm9, %v2466_v24, 0.0  ;;  %v1004_v36 = vsel %vm985_vm9, %v2467_v23, 0.0  ;;  %v988_v37 = vsel %vm985_vm9, %v2471_v16, %v2466_v24  ;;  %v989_v40 = vsel %vm985_vm9, %v2472_v15, %v2467_v23 }
 0x1b4   : > { %v2482_v41 = vunpack.i.h.bf16 %v2480_v31  ;;  %v2481_v42 = vunpack.i.l.bf16 %v2480_v31  ;;  %v2475_v43 = vpop.permute.xlu0 %2474  ;;  %2162 = vmatprep.subr.msk.bf16.mxu0 %vm3497_vm4, %v2160_v29  ;;  %v2198_v44 = vpack.c.bf16 %v1004_v36, %v1003_v25  ;;  %v2201_v45 = vpack.c.bf16 %v989_v40, %v988_v37 }
 0x1b5   : > { %v2477_v47 = vunpack.i.h.bf16 %v2475_v43  ;;  %v2476_v49 = vunpack.i.l.bf16 %v2475_v43 }
 0x1b6   : > { %v1047_v50 = vsel %vm1046_vm10, %v2481_v42, %v2482_v41  ;;  %2200 = vmatprep.subr.msk.bf16.mxu1 %vm3497_vm4, %v2198_v44 }
 0x1b7   : > { %v990_v51 = vsel %vm985_vm9, %v2477_v47, %v2476_v49  ;;  %v1005_v52 = vsel %vm985_vm9, %v2476_v49, 0.0  ;;  %2165 = vmatpush1.bf16.msk.msra.mxu0 %vm3504_vm5, %v2163_v46  ;;  %2203 = vmatpush1.bf16.msk.msra.mxu1 %vm3504_vm5, %v2201_v45  ;;  %v2490_v53 = vpop.permute.xlu1 %2489 }
 0x1b8   : > { %v2204_v54 = vpack.c.bf16 %v2482_v41, %v1005_v52  ;;  %v2207_v55 = vpack.c.bf16 %v1047_v50, %v990_v51  ;;  %v2492_v56 = vunpack.i.h.bf16 %v2490_v53  ;;  %v2491_v33 = vunpack.i.l.bf16 %v2490_v53  ;;  %v2485_v58 = vpop.permute.xlu0 %2484  ;;  %2167 = vmatprep.subr.bf16.mxu0 %v2166_v19 }
 0x1b9   : > { %v2487_v59 = vunpack.i.h.bf16 %v2485_v58  ;;  %v2486_v60 = vunpack.i.l.bf16 %v2485_v58 }
 0x1ba   : > { %2206 = vmatprep.subr.msk.bf16.mxu1 %vm2205_vm11, %v2204_v54  ;;  %v1049_v61 = vsel %vm1046_vm10, %v2491_v33, %v2492_v56  ;;  %vm1097_vm11 = vcmask 908288  }
 0x1bb   : > { %v2210_v62 = vpack.c.bf16 %v2492_v56, %v2487_v59  ;;  %2169 = vmatpush1.bf16.msra.mxu0 %v2168_v20  ;;  %2209 = vmatpush1.bf16.msk.msra.mxu1 %vm2208_vm15, %v2207_v55  ;;  %v2500_v4 = vpop.permute.xlu1 %2499  ;;  %v1048_v9 = vsel %vm1046_vm10, %v2486_v60, %v2487_v59 }
 0x1bc   : > { %v2495_v19 = vpop.permute.xlu0 %2494  ;;  %2171 = vmatprep.subr.bf16.mxu0 %v2170_v21  ;;  %v2213_v39 = vpack.c.bf16 %v1049_v61, %v1048_v9  ;;  %v2502_v32 = vunpack.i.h.bf16 %v2500_v4  ;;  %v2501_v35 = vunpack.i.l.bf16 %v2500_v4 }
 0x1bd   : > { %v2497_v3 = vunpack.i.h.bf16 %v2495_v19  ;;  %v2496_v7 = vunpack.i.l.bf16 %v2495_v19  ;;  %2212 = vmatprep.subr.msk.bf16.mxu1 %vm3640_vm6, %v2210_v62 }
 0x1be   : > { %v1050_v5 = vsel %vm1046_vm10, %v2501_v35, %v2502_v32 }
 0x1bf   : > { %v925_v2 = vsel %vm924_vm1, %v2497_v3, %v2496_v7  ;;  %v940_v8 = vsel %vm924_vm1, %v2496_v7, 0.0  ;;  %2173 = vmatpush1.bf16.msra.mxu0 %v2172_v22  ;;  %2214 = vmatpush1.bf16.msra.mxu1 %v2213_v39  ;;  %v2510_v1 = vpop.permute.xlu1 %2509 }
 0x1c0   : > { %v2174_v6 = vpack.c.bf16 %v940_v8, %v3426_v13  ;;  %v2177_v20 = vpack.c.bf16 %v925_v2, %v3424_v12  ;;  %v2505_v21 = vpop.permute.xlu0 %2504  ;;  %v2512_v10 = vunpack.i.h.bf16 %v2510_v1  ;;  %v2511_v14 = vunpack.i.l.bf16 %v2510_v1 }
 0x1c1   : > { %v2507_v15 = vunpack.i.h.bf16 %v2505_v21  ;;  %v2506_v0 = vunpack.i.l.bf16 %v2505_v21 }
 0x1c2   : > { %2176 = vmatprep.subr.msk.bf16.mxu0 %vm2175_vm2, %v2174_v6  ;;  %v942_v22 = vsel %vm924_vm1, %v2512_v10, 0.0  ;;  %v941_v16 = vsel %vm924_vm1, %v2511_v14, 0.0 }
 0x1c3   : > { %v2215_v17 = vpack.c.bf16 %v2507_v15, %v2502_v32  ;;  %v2180_v13 = vpack.c.bf16 %v942_v22, %v941_v16  ;;  %2179 = vmatpush1.bf16.msk.msra.mxu0 %vm2178_vm8, %v2177_v20  ;;  %v1051_v12 = vsel %vm1046_vm10, %v2506_v0, %v2507_v15  ;;  %v2520_v18 = vpop.permute.xlu1 %2519 }
 0x1c4   : > { %v2515_v23 = vpop.permute.xlu0 %2514  ;;  %v2218_v24 = vpack.c.bf16 %v1051_v12, %v1050_v5  ;;  %v2522_v26 = vunpack.i.h.bf16 %v2520_v18  ;;  %v2521_v27 = vunpack.i.l.bf16 %v2520_v18  ;;  %v1140_v18 = vld [vmem:[#allocation14 + $0x10] sm:$0xff] }
 0x1c5   : > { %v2517_v29 = vunpack.i.h.bf16 %v2515_v23  ;;  %v2516_v31 = vunpack.i.l.bf16 %v2515_v23  ;;  %2217 = vmatprep.subr.msk.bf16.mxu1 %vm3640_vm6, %v2215_v17  ;;  %2182 = vmatprep.subr.msk.bf16.mxu0 %vm3559_vm13, %v2180_v13 }
 0x1c6   : > { %2219 = vmatpush1.bf16.msra.mxu1 %v2218_v24  ;;  %v1114_v25 = vsel %vm1097_vm11, %v2522_v26, 0.0  ;;  %v1113_v36 = vsel %vm1097_vm11, %v2521_v27, 0.0  ;;  %v1141_v24 = vld [vmem:[#allocation14 + $0x18] sm:$0xff] }
 0x1c7   : > { %v927_v37 = vsel %vm924_vm1, %v2517_v29, %v2512_v10  ;;  %v926_v40 = vsel %vm924_vm1, %v2516_v31, %v2511_v14  ;;  %v2220_v41 = vpack.c.bf16 %v1114_v25, %v1113_v36  ;;  %v2530_v42 = vpop.permute.xlu1 %2529  ;;  %v1149_v29 = vld [vmem:[#allocation14 + $0x58] sm:$0xff]  ;;  %v1147_v31 = vld [vmem:[#allocation14 + $0x48] sm:$0xff]  ;;  %v1152_v36 = vld [vmem:[#allocation14 + $0x70] sm:$0xff] }
 0x1c8   : > { %v2183_v43 = vpack.c.bf16 %v927_v37, %v926_v40  ;;  %v2525_v44 = vpop.permute.xlu0 %2524  ;;  %v2532_v45 = vunpack.i.h.bf16 %v2530_v42  ;;  %v2531_v46 = vunpack.i.l.bf16 %v2530_v42  ;;  %v1151_v25 = vld [vmem:[#allocation14 + $0x68] sm:$0xff]  ;;  %v1150_v37 = vld [vmem:[#allocation14 + $0x60] sm:$0xff]  ;;  %v1153_v42 = vld [vmem:[#allocation14 + $0x78] sm:$0xff] }
 0x1c9   : > { %v2527_v47 = vunpack.i.h.bf16 %v2525_v44  ;;  %v2526_v49 = vunpack.i.l.bf16 %v2525_v44  ;;  %2222 = vmatprep.subr.msk.bf16.mxu1 %vm3559_vm13, %v2220_v41  ;;  %v1154_v40 = vld [vmem:[#allocation14 + $0x80] sm:$0xff]  ;;  %v1155_v41 = vld [vmem:[#allocation14 + $0x88] sm:$0xff] }
 0x1ca   : > { %2185 = vmatpush1.bf16.msk.msra.mxu0 %vm3578_vm0, %v2183_v43  ;;  %v944_v50 = vsel %vm924_vm1, %v2532_v45, 0.0  ;;  %v943_v51 = vsel %vm924_vm1, %v2531_v46, 0.0  ;;  %v1157_v43 = vld [vmem:[#allocation14 + $0x98] sm:$0xff]  ;;  %v1158_v44 = vld [vmem:[#allocation14 + $0xa0] sm:$0xff] }
 0x1cb   : > { %v1099_v52 = vsel %vm1097_vm11, %v2527_v47, %v2522_v26  ;;  %v1098_v53 = vsel %vm1097_vm11, %v2526_v49, %v2521_v27  ;;  %v2186_v54 = vpack.c.bf16 %v944_v50, %v943_v51  ;;  %v2540_v55 = vpop.permute.xlu1 %2539  ;;  %v1145_v26 = vld [vmem:[#allocation14 + $0x38] sm:$0xff]  ;;  %v1148_v27 = vld [vmem:[#allocation14 + $0x50] sm:$0xff]  ;;  %v1159_v49 = vld [vmem:[#allocation14 + $0xa8] sm:$0xff] }
 0x1cc   : > { %v2223_v56 = vpack.c.bf16 %v1099_v52, %v1098_v53  ;;  %v2535_v33 = vpop.permute.xlu0 %2534  ;;  %v2542_v58 = vunpack.i.h.bf16 %v2540_v55  ;;  %v2541_v59 = vunpack.i.l.bf16 %v2540_v55  ;;  %v1161_v47 = vld [vmem:[#allocation14 + $0xb8] sm:$0xff]  ;;  %v1163_v50 = vld [vmem:[#allocation14 + $0xc8] sm:$0xff]  ;;  %v1164_v51 = vld [vmem:[#allocation14 + $0xd0] sm:$0xff] }
 0x1cd   : > { %v2537_v60 = vunpack.i.h.bf16 %v2535_v33  ;;  %v2536_v38 = vunpack.i.l.bf16 %v2535_v33  ;;  %2188 = vmatprep.subr.msk.bf16.mxu0 %vm3559_vm13, %v2186_v54  ;;  %v1162_v52 = vld [vmem:[#allocation14 + $0xc0] sm:$0xff]  ;;  %v1167_v54 = vld [vmem:[#allocation14 + $0xe8] sm:$0xff]  ;;  %v1165_v55 = vld [vmem:[#allocation14 + $0xd8] sm:$0xff] }
 0x1ce   : > { %2225 = vmatpush1.bf16.msk.msra.mxu1 %vm3578_vm0, %v2223_v56  ;;  %v1116_v61 = vsel %vm1097_vm11, %v2542_v58, 0.0  ;;  %v1115_v62 = vsel %vm1097_vm11, %v2541_v59, 0.0  ;;  %v1166_v53 = vld [vmem:[#allocation14 + $0xe0] sm:$0xff] }
 0x1cf   : > { %v929_v4 = vsel %vm924_vm1, %v2537_v60, %v2532_v45  ;;  %v928_v9 = vsel %vm924_vm1, %v2536_v38, %v2531_v46  ;;  %v2226_v19 = vpack.c.bf16 %v1116_v61, %v1115_v62  ;;  %v2550_v39 = vpop.permute.xlu1 %2549  ;;  %v1156_v45 = vld [vmem:[#allocation14 + $0x90] sm:$0xff] }
 0x1d0   : > { %v2189_v3 = vpack.c.bf16 %v929_v4, %v928_v9  ;;  %v2545_v7 = vpop.permute.xlu0 %2544  ;;  %v2552_v32 = vunpack.i.h.bf16 %v2550_v39  ;;  %v2551_v35 = vunpack.i.l.bf16 %v2550_v39  ;;  %v1160_v46 = vld [vmem:[#allocation14 + $0xb0] sm:$0xff] }
 0x1d1   : > { %v2547_v2 = vunpack.i.h.bf16 %v2545_v7  ;;  %v2546_v8 = vunpack.i.l.bf16 %v2545_v7  ;;  %2228 = vmatprep.subr.msk.bf16.mxu1 %vm3559_vm13, %v2226_v19 }
 0x1d2   : > { %2191 = vmatpush1.bf16.msk.msra.mxu0 %vm3578_vm0, %v2189_v3  ;;  %v1002_v1 = vsel %vm985_vm9, %v2552_v32, 0.0  ;;  %v1001_v6 = vsel %vm985_vm9, %v2551_v35, 0.0 }
 0x1d3   : > { %v1101_v20 = vsel %vm1097_vm11, %v2547_v2, %v2542_v58  ;;  %v1100_v21 = vsel %vm1097_vm11, %v2546_v8, %v2541_v59  ;;  %v2192_v10 = vpack.c.bf16 %v1002_v1, %v1001_v6  ;;  %v1096_v14 = vpop.permute.xlu1 %1095 }
 0x1d4   : > { %v2229_v15 = vpack.c.bf16 %v1101_v20, %v1100_v21  ;;  %v2555_v0 = vpop.permute.xlu0 %2554  ;;  %v1117_v5 = vsel %vm1097_vm11, %v1096_v14, 0.0 }
 0x1d5   : > { %v2557_v22 = vunpack.i.h.bf16 %v2555_v0  ;;  %v2556_v11 = vunpack.i.l.bf16 %v2555_v0  ;;  %2194 = vmatprep.subr.msk.bf16.mxu0 %vm3497_vm4, %v2192_v10 }
 0x1d6   : > { %2231 = vmatpush1.bf16.msk.msra.mxu1 %vm3578_vm0, %v2229_v15 }
 0x1d7   : > { %v987_v16 = vsel %vm985_vm9, %v2557_v22, %v2552_v32  ;;  %v986_v17 = vsel %vm985_vm9, %v2556_v11, %v2551_v35  ;;  %2106 = vmatprep.subr.msk.mxu1 %vm806_vm12, %v1117_v5 }
 0x1d8   : > { %v2195_v13 = vpack.c.bf16 %v987_v16, %v986_v17  ;;  %v1094_v12 = vpop.permute.xlu0 %1093 }
 0x1d9   : > { %v1102_v23 = vsel %vm1097_vm11, %v1094_v12, %v1096_v14 }
 0x1da   : > { %2197 = vmatpush1.bf16.msk.msra.mxu0 %vm3504_vm5, %v2195_v13  ;;  %2107 = vmatpush1.msk.msra.mxu1 %vm805_vm14, %v1102_v23 }
 0x1db   : > { %2010 = vmatmul.mubr.msk.f32.vlgmr.msra.gmra.mrb[0].mxu1 %vm1258_vm7, %v1140_v18 }
 0x1dc   : > { %1484 = vmatprep.mubr.f32.mxu1 %v2978_v30 }
 0x1dd   : > { %1354 = vmatmul.mubr.f32.vlgmr.msra.gmra.mrb[0].mxu0 %v1138_v57 }
 0x1de   : > { %1359 = vmatprep.mubr.f32.mxu0 %v1142_v28 }
 0x1df   : > { %2011 = vmatmul.mubr.msk.f32.gmra.mrb[2].mxu1 %vm1258_vm7, %v1143_v48 }
 0x1e0   : > { %1490 = vmatprep.mubr.f32.mxu1 %v2978_v30 }
 0x1e1   : > { %1360 = vmatmul.mubr.f32.gmra.mrb[2].mxu0 %v1141_v24 }
 0x1e2   : > { %1365 = vmatprep.mubr.f32.mxu0 %v1145_v26 }
 0x1e3   : > { %2012 = vmatmul.mubr.msk.f32.gmra.mrb[4].mxu1 %vm1258_vm7, %v1146_v63 }
 0x1e4   : > { %1496 = vmatprep.mubr.f32.mxu1 %v2978_v30 }
 0x1e5   : > { %1366 = vmatmul.mubr.f32.gmra.mrb[4].mxu0 %v1144_v34 }
 0x1e6   : > { %1371 = vmatprep.mubr.f32.mxu0 %v1148_v27 }
 0x1e7   : > { %2013 = vmatmul.mubr.msk.f32.gmra.mrb[6].mxu1 %vm1258_vm7, %v1149_v29 }
 0x1e8   : > { %1502 = vmatprep.mubr.f32.mxu1 %v2978_v30 }
 0x1e9   : > { %1372 = vmatmul.mubr.f32.gmra.mrb[6].mxu0 %v1147_v31 }
 0x1ea   : > { %1377 = vmatprep.mubr.f32.mxu0 %v1151_v25 }
 0x1eb   : > { %2014 = vmatmul.mubr.msk.f32.gmra.mrb[8].mxu1 %vm1258_vm7, %v1152_v36  ;;  %v3739_v36 = vld [vmem:[%s519_s6] sm:$0xff] }
 0x1ec   : > { %1508 = vmatprep.mubr.f32.mxu1 %v2978_v30 }
 0x1ed   : > { %1378 = vmatmul.mubr.f32.gmra.mrb[8].mxu0 %v1150_v37  ;;  %v1543_v37 = vld [vmem:[#allocation15] sm:$0xff] }
 0x1ee   : > { %1383 = vmatprep.mubr.f32.mxu0 %v1154_v40 }
 0x1ef   : > { %2015 = vmatmul.mubr.msk.f32.gmra.mrb[10].mxu1 %vm1258_vm7, %v1155_v41 }
 0x1f0   : > { %1514 = vmatprep.mubr.f32.mxu1 %v2978_v30 }
 0x1f1   : > { %1384 = vmatmul.mubr.f32.gmra.mrb[10].mxu0 %v1153_v42 }
 0x1f2   : > { %1389 = vmatprep.mubr.f32.mxu0 %v1157_v43 }
 0x1f3   : > { %2016 = vmatmul.mubr.msk.f32.gmra.mrb[12].mxu1 %vm1258_vm7, %v1158_v44  ;;  %v3745_v44 = vld [vmem:[%s519_s6 + $0x8] sm:$0xff] }
 0x1f4   : > { %1520 = vmatprep.mubr.f32.mxu1 %v2978_v30 }
 0x1f5   : > { %1390 = vmatmul.mubr.f32.gmra.mrb[12].mxu0 %v1156_v45  ;;  %v1544_v45 = vld [vmem:[#allocation15 + $0x8] sm:$0xff] }
 0x1f6   : > { %1395 = vmatprep.mubr.f32.mxu0 %v1160_v46 }
 0x1f7   : > { %2017 = vmatmul.mubr.msk.f32.gmra.mrb[14].mxu1 %vm1258_vm7, %v1161_v47 }
 0x1f8   : > { %1526 = vmatprep.mubr.f32.mxu1 %v2978_v30 }
 0x1f9   : > { %1396 = vmatmul.mubr.f32.gmra.mrb[14].mxu0 %v1159_v49 }
 0x1fa   : > { %1401 = vmatprep.mubr.f32.mxu0 %v1163_v50 }
 0x1fb   : > { %2018 = vmatmul.mubr.msk.f32.gmra.mrb[16].mxu1 %vm1258_vm7, %v1164_v51 }
 0x1fc   : > { %1532 = vmatprep.mubr.f32.mxu1 %v2978_v30 }
 0x1fd   : > { %1402 = vmatmul.mubr.f32.gmra.mrb[16].mxu0 %v1162_v52 }
 0x1fe   : > { %1407 = vmatprep.mubr.f32.mxu0 %v1166_v53 }
 0x1ff   : > { %2019 = vmatmul.mubr.msk.f32.gmra.mrb[18].mxu1 %vm1258_vm7, %v1167_v54  ;;  %v1609_v54 = vmul.f32 %v1543_v37, %v3739_v36 }
 0x200   : > { %1743 = vmatprep.mubr.f32.mxu1 %v2978_v30 }
 0x201   : > { %1408 = vmatmul.mubr.f32.gmra.mrb[18].mxu0 %v1165_v55 }
 0x2ae   : > { %v1480_v56 = vpop.f32.mrb[0].mxu1 }
 0x2af   : > { %v1482_v33 = vpop.f32.mrb[1].mxu1 }
 0x2b0   : > { %v1355_v58 = vpop.f32.mrb[0].mxu0 }
 0x2b1   : > { %v1481_v59 = vadd.f32 %v1480_v56, %v1355_v58  ;;  %v1357_v60 = vpop.f32.mrb[1].mxu0  ;;  %v1610_v58 = vmul.f32 %v1544_v45, %v3745_v44 }
 0x2b2   : > { %v1483_v38 = vadd.f32 %v1482_v33, %v1357_v60  ;;  %v1486_v61 = vpop.f32.mrb[2].mxu1 }
 0x2b3   : > { %v1549_v62 = vsub.f32 0.0, %v1481_v59  ;;  %v1488_v4 = vpop.f32.mrb[3].mxu1  ;;  %v1545_v59 = vld [vmem:[#allocation15 + $0x10] sm:$0xff] }
 0x2b4   : > { %v1550_v9 = vsub.f32 0.0, %v1483_v38  ;;  %v1361_v19 = vpop.f32.mrb[2].mxu0 }
 0x2b5   : > { %v1551_v39 = vmul.f32 1.442695, %v1549_v62  ;;  %v1487_v3 = vadd.f32 %v1486_v61, %v1361_v19  ;;  %v1363_v7 = vpop.f32.mrb[3].mxu0  ;;  %v1546_v61 = vld [vmem:[#allocation15 + $0x18] sm:$0xff]  ;;  %v1625_v19 = vmul.f32 %v1545_v59, %v3739_v36 }
 0x2b6   : > { %v1553_v32 = vmul.f32 1.442695, %v1550_v9  ;;  %v1489_v35 = vadd.f32 %v1488_v4, %v1363_v7  ;;  %v1492_v2 = vpop.f32.mrb[4].mxu1  ;;  %v1540_v59 = vld [vmem:[%s3372_s3 + $0x8] sm:$0xff] }
 0x2b7   : > { %2558 = vpow2.f32 %v1551_v39  ;;  %v1591_v30 = vsub.f32 0.0, %v1487_v3  ;;  %v1494_v8 = vpop.f32.mrb[5].mxu1 }
 0x2b8   : > { %2560 = vpow2.f32 %v1553_v32  ;;  %v1592_v1 = vsub.f32 0.0, %v1489_v35  ;;  %v1367_v6 = vpop.f32.mrb[4].mxu0  ;;  %v1626_v35 = vmul.f32 %v1546_v61, %v3745_v44 }
 0x2b9   : > { %v1593_v20 = vmul.f32 1.442695, %v1591_v30  ;;  %v1493_v21 = vadd.f32 %v1492_v2, %v1367_v6  ;;  %v1369_v10 = vpop.f32.mrb[5].mxu0 }
 0x2ba   : > { %v1595_v14 = vmul.f32 1.442695, %v1592_v1  ;;  %v1495_v15 = vadd.f32 %v1494_v8, %v1369_v10  ;;  %v1498_v0 = vpop.f32.mrb[6].mxu1 }
 0x2bb   : > { %2562 = vpow2.f32 %v1593_v20  ;;  %v1500_v5 = vpop.f32.mrb[7].mxu1 }
 0x2bc   : > { %2564 = vpow2.f32 %v1595_v14  ;;  %v1373_v22 = vpop.f32.mrb[6].mxu0 }
 0x2bd   : > { %v1499_v11 = vadd.f32 %v1498_v0, %v1373_v22  ;;  %v1375_v16 = vpop.f32.mrb[7].mxu0  ;;  %2566 = vtanh.f32 %v1493_v21 }
 0x2be   : > { %v1501_v17 = vadd.f32 %v1500_v5, %v1375_v16  ;;  %v1504_v13 = vpop.f32.mrb[8].mxu1  ;;  %2568 = vtanh.f32 %v1495_v15 }
 0x2bf   : > { %v1506_v12 = vpop.f32.mrb[9].mxu1 }
 0x2c0   : > { %v1379_v18 = vpop.f32.mrb[8].mxu0 }
 0x2c1   : > { %v2559_v23 = vpop.eup %2558  ;;  %v1505_v57 = vadd.f32 %v1504_v13, %v1379_v18  ;;  %v1381_v28 = vpop.f32.mrb[9].mxu0 }
 0x2c2   : > { %v2561_v48 = vpop.eup %2560  ;;  %v1555_v24 = vadd.f32 1.0, %v2559_v23  ;;  %v1507_v26 = vadd.f32 %v1506_v12, %v1381_v28  ;;  %v1510_v63 = vpop.f32.mrb[10].mxu1 }
 0x2c3   : > { %v1556_v34 = vadd.f32 1.0, %v2561_v48  ;;  %v1575_v27 = vadd.f32 1.0, %v1505_v57  ;;  %v1512_v29 = vpop.f32.mrb[11].mxu1 }
 0x2c4   : > { %2570 = vrcp.f32 %v1555_v24  ;;  %v1576_v31 = vadd.f32 1.0, %v1507_v26  ;;  %v1385_v25 = vpop.f32.mrb[10].mxu0 }
 0x2c5   : > { %v2563_v40 = vpop.eup %2562  ;;  %2572 = vrcp.f32 %v1556_v34  ;;  %v1577_v41 = vsub.f32 0.0, %v1575_v27  ;;  %v3741_v42 = vadd.f32 %v1510_v63, %v1385_v25  ;;  %v1387_v43 = vpop.f32.mrb[11].mxu0 }
 0x2c6   : > { %v2565_v46 = vpop.eup %2564  ;;  %v1597_v47 = vadd.f32 1.0, %v2563_v40  ;;  %2574 = vtanh.f32 %v1499_v11  ;;  %v1578_v49 = vsub.f32 0.0, %v1576_v31  ;;  %v3747_v50 = vadd.f32 %v1512_v29, %v1387_v43  ;;  %v1516_v51 = vpop.f32.mrb[12].mxu1 }
 0x2c7   : > { %v1598_v52 = vadd.f32 1.0, %v2565_v46  ;;  %2576 = vtanh.f32 %v1501_v17  ;;  %v1579_v53 = vmul.f32 1.442695, %v1577_v41  ;;  %v1518_v55 = vpop.f32.mrb[13].mxu1  ;;  %v2567_v3 = vpop.eup %2566 }
 0x2c8   : > { %2578 = vrcp.f32 %v1597_v47  ;;  %v1581_v56 = vmul.f32 1.442695, %v1578_v49  ;;  %v1391_v33 = vpop.f32.mrb[12].mxu0  ;;  %v2569_v2 = vpop.eup %2568 }
 0x2c9   : > { %2580 = vrcp.f32 %v1598_v52  ;;  %v1517_v60 = vadd.f32 %v1516_v51, %v1391_v33  ;;  %v1393_v38 = vpop.f32.mrb[13].mxu0 }
 0x2ca   : > { %2582 = vpow2.f32 %v1579_v53  ;;  %v1519_v62 = vadd.f32 %v1518_v55, %v1393_v38  ;;  %v1522_v4 = vpop.f32.mrb[14].mxu1 }
 0x2cb   : > { %2584 = vpow2.f32 %v1581_v56  ;;  %v1611_v9 = vadd.f32 %v1609_v54, %v1517_v60  ;;  %v1524_v39 = vpop.f32.mrb[15].mxu1 }
 0x2cc   : > { %v1612_v7 = vadd.f32 %v1610_v58, %v1519_v62  ;;  %v1397_v32 = vpop.f32.mrb[14].mxu0  ;;  %v1539_v58 = vld [vmem:[%s3372_s3] sm:$0xff] }
 0x2cd   : > { %v1613_v30 = vsub.f32 0.0, %v1611_v9  ;;  %v1523_v8 = vadd.f32 %v1522_v4, %v1397_v32  ;;  %v1399_v1 = vpop.f32.mrb[15].mxu0 }
 0x2ce   : > { %v2571_v6 = vpop.eup %2570  ;;  %v1614_v20 = vsub.f32 0.0, %v1612_v7  ;;  %v1525_v21 = vadd.f32 %v1524_v39, %v1399_v1  ;;  %v1528_v10 = vpop.f32.mrb[16].mxu1 }
 0x2cf   : > { %v2573_v14 = vpop.eup %2572  ;;  %v1615_v15 = vmul.f32 1.442695, %v1613_v30  ;;  %v1627_v0 = vadd.f32 %v1625_v19, %v1523_v8  ;;  %v1530_v5 = vpop.f32.mrb[17].mxu1  ;;  %v3753_v22 = vmul.f32 %v2571_v6, %v2567_v3 }
 0x2d0   : > { %v2575_v11 = vpop.eup %2574  ;;  %v1617_v16 = vmul.f32 1.442695, %v1614_v20  ;;  %v1628_v17 = vadd.f32 %v1626_v35, %v1525_v21  ;;  %v1403_v13 = vpop.f32.mrb[16].mxu0  ;;  %v3755_v12 = vmul.f32 %v2573_v14, %v2569_v2 }
 0x2d1   : > { %v2577_v18 = vpop.eup %2576  ;;  %2586 = vpow2.f32 %v1615_v15  ;;  %v1629_v23 = vadd.f32 1.0, %v1627_v0  ;;  %v1529_v57 = vadd.f32 %v1528_v10, %v1403_v13  ;;  %v1405_v28 = vpop.f32.mrb[17].mxu0  ;;  %v1547_v10 = vld [vmem:[%s3846_s8] sm:$0xff]  ;;  %v1548_v0 = vld [vmem:[%s3846_s8 + $0x8] sm:$0xff] }
 0x2d2   : > { %v2579_v48 = vpop.eup %2578  ;;  %2588 = vpow2.f32 %v1617_v16  ;;  %v1630_v24 = vadd.f32 1.0, %v1628_v17  ;;  %v1531_v26 = vadd.f32 %v1530_v5, %v1405_v28  ;;  %v1534_v63 = vpop.f32.mrb[18].mxu1 }
 0x2d3   : > { %v2581_v34 = vpop.eup %2580  ;;  %v1631_v27 = vsub.f32 0.0, %v1629_v23  ;;  %v1536_v29 = vpop.f32.mrb[19].mxu1  ;;  %v1605_v31 = vmul.f32 %v2579_v48, %v2575_v11 }
 0x2d4   : > { %v2583_v25 = vpop.eup %2582  ;;  %v1632_v37 = vsub.f32 0.0, %v1630_v24  ;;  %v1409_v40 = vpop.f32.mrb[18].mxu0  ;;  %v1606_v41 = vmul.f32 %v2581_v34, %v2577_v18 }
 0x2d5   : > { %v2585_v43 = vpop.eup %2584  ;;  %v1583_v45 = vadd.f32 1.0, %v2583_v25  ;;  %v1535_v46 = vadd.f32 %v1534_v63, %v1409_v40  ;;  %v1411_v47 = vpop.f32.mrb[19].mxu0  ;;  %v1633_v52 = vmul.f32 1.442695, %v1631_v27 }
 0x2d6   : > { %v1584_v49 = vadd.f32 1.0, %v2585_v43  ;;  %v1537_v51 = vadd.f32 %v1536_v29, %v1411_v47  ;;  %v1635_v53 = vmul.f32 1.442695, %v1632_v37  ;;  %v1675_v43 = vld [vmem:[%s3847_s9] sm:$0xff] }
 0x2d7   : > { %2590 = vrcp.f32 %v1583_v45  ;;  %v1563_v45 = vsub.f32 0.0, %v3741_v42 }
 0x2d8   : > { %2592 = vrcp.f32 %v1584_v49 }
 0x2d9   : > { %2594 = vtanh.f32 %v1529_v57 }
 0x2da   : > { %2596 = vpow2.f32 %v1633_v52 }
 0x2db   : > { %v2587_v54 = vpop.eup %2586  ;;  %2598 = vpow2.f32 %v1635_v53 }
 0x2dc   : > { %v2589_v55 = vpop.eup %2588  ;;  %v1619_v56 = vadd.f32 1.0, %v2587_v54  ;;  %2600 = vtanh.f32 %v1531_v26 }
 0x2dd   : > { %v1620_v33 = vadd.f32 1.0, %v2589_v55 }
 0x2de   : > { %2602 = vrcp.f32 %v1619_v56 }
 0x2df   : > { %2604 = vrcp.f32 %v1620_v33 }
 0x2e1   : > { %v2591_v60 = vpop.eup %2590 }
 0x2e2   : > { %v2593_v38 = vpop.eup %2592  ;;  %v1589_v61 = vmul.f32 %v2591_v60, %v1539_v58 }
 0x2e3   : > { %v1590_v62 = vmul.f32 %v2593_v38, %v1540_v59  ;;  %v2595_v4 = vpop.eup %2594 }
 0x2e4   : > { %v1607_v9 = vadd.f32 %v1605_v31, %v1589_v61  ;;  %v2597_v19 = vpop.eup %2596 }
 0x2e5   : > { %v1608_v39 = vadd.f32 %v1606_v41, %v1590_v62  ;;  %v2599_v3 = vpop.eup %2598  ;;  %v1637_v7 = vadd.f32 1.0, %v2597_v19 }
 0x2e6   : > { %1758 = vst [vmem:[%s3760_s1 + $0x20] sm:$0xff] %v1607_v9  ;;  %v2601_v32 = vpop.eup %2600  ;;  %v1638_v35 = vadd.f32 1.0, %v2599_v3 }
 0x2e7   : > { %1759 = vst [vmem:[%s3760_s1 + $0x28] sm:$0xff] %v1608_v39  ;;  %2606 = vrcp.f32 %v1637_v7 }
 0x2e8   : > { %v2603_v2 = vpop.eup %2602  ;;  %2608 = vrcp.f32 %v1638_v35 }
 0x2e9   : > { %v2605_v30 = vpop.eup %2604  ;;  %v1647_v8 = vmul.f32 %v2603_v2, %v2595_v4 }
 0x2ea   : > { %v1648_v1 = vmul.f32 %v2605_v30, %v2601_v32 }
 0x2f1   : > { %v2607_v6 = vpop.eup %2606 }
 0x2f2   : > { %v2609_v20 = vpop.eup %2608  ;;  %v1643_v21 = vmul.f32 %v2607_v6, %v3739_v36 }
 0x2f3   : > { %v1644_v14 = vmul.f32 %v2609_v20, %v3745_v44 }
 0x2f4   : > { %v1649_v15 = vadd.f32 %v1647_v8, %v1643_v21 }
 0x2f5   : > { %v1650_v5 = vadd.f32 %v1648_v1, %v1644_v14 }
 0x2f6   : > { %v1651_v11 = vmul.f32 %v1649_v15, %v1547_v10  ;;  %1760 = vst [vmem:[%s3760_s1 + $0x30] sm:$0xff] %v1649_v15 }
 0x2f7   : > { %v1652_v16 = vmul.f32 %v1650_v5, %v1548_v0  ;;  %1761 = vst [vmem:[%s3760_s1 + $0x38] sm:$0xff] %v1650_v5 }
 0x2f8   : > { %v1653_v17 = vadd.f32 %v1651_v11, %v1535_v46  ;;  %v1564_v46 = vsub.f32 0.0, %v3747_v50 }
 0x2f9   : > { %v1654_v13 = vadd.f32 %v1652_v16, %v1537_v51 }
 0x2fa   : > { %v1655_v18 = vsub.f32 0.0, %v1653_v17  ;;  %v1567_v47 = vmul.f32 1.442695, %v1564_v46 }
 0x2fb   : > { %v1656_v36 = vsub.f32 0.0, %v1654_v13 }
 0x2fc   : > { %v1657_v23 = vmul.f32 1.442695, %v1655_v18 }
 0x2fd   : > { %v1659_v57 = vmul.f32 1.442695, %v1656_v36 }
 0x2fe   : > { %2610 = vpow2.f32 %v1657_v23 }
 0x2ff   : > { %2612 = vpow2.f32 %v1659_v57 }
 0x300   : > { %2614 = vtanh.f32 %v1649_v15 }
 0x301   : > { %2616 = vtanh.f32 %v1650_v5 }
 0x308   : > { %v2611_v28 = vpop.eup %2610 }
 0x309   : > { %v2613_v44 = vpop.eup %2612  ;;  %v1661_v48 = vadd.f32 1.0, %v2611_v28 }
 0x30a   : > { %v1662_v24 = vadd.f32 1.0, %v2613_v44  ;;  %v2615_v26 = vpop.eup %2614 }
 0x30b   : > { %2618 = vrcp.f32 %v1661_v48  ;;  %v2617_v63 = vpop.eup %2616 }
 0x30c   : > { %2620 = vrcp.f32 %v1662_v24 }
 0x315   : > { %v2619_v34 = vpop.eup %2618 }
 0x316   : > { %v2621_v27 = vpop.eup %2620  ;;  %v1669_v29 = vmul.f32 %v2619_v34, %v2615_v26 }
 0x317   : > { %v1670_v31 = vmul.f32 %v2621_v27, %v2617_v63 }
 0x318   : > { %v1673_v25 = vadd.f32 %v3753_v22, %v1669_v29  ;;  %v1565_v22 = vmul.f32 1.442695, %v1563_v45 }
 0x319   : > { %v1674_v37 = vadd.f32 %v3755_v12, %v1670_v31 }
 0x31a   : > { %v2234_v40 = vpack.c.bf16 %v1607_v9, %v1673_v25  ;;  %1756 = vst [vmem:[%s3760_s1 + $0x10] sm:$0xff] %v1673_v25  ;;  %2622 = vpow2.f32 %v1565_v22 }
 0x31b   : > { %v2232_v41 = vpack.c.bf16 %v1608_v39, %v1674_v37  ;;  %1757 = vst [vmem:[%s3760_s1 + $0x18] sm:$0xff] %v1674_v37  ;;  %2624 = vpow2.f32 %v1567_v47 }
 0x31d   : > { %2233 = vmatprep.subr.bf16.mxu1 %v2232_v41 }
 0x31e   : > { %2235 = vmatpush1.bf16.msra.mxu1 %v2234_v40 }
 0x321   : > { %2020 = vmatmul.mubr.msk.f32.vlgmr.msra.gmra.mrb[20].mxu1 %vm729_vm3, %v1675_v43 }
 0x324   : > { %v2623_v12 = vpop.eup %2622 }
 0x325   : > { %v2625_v49 = vpop.eup %2624  ;;  %v1569_v51 = vadd.f32 1.0, %v2623_v12 }
 0x326   : > { %v1570_v52 = vadd.f32 1.0, %v2625_v49 }
 0x327   : > { %2626 = vrcp.f32 %v1569_v51 }
 0x328   : > { %2628 = vrcp.f32 %v1570_v52 }
 0x331   : > { %v2627_v50 = vpop.eup %2626 }
 0x332   : > { %v2629_v54 = vpop.eup %2628 }
 0x3f4   : > { %v1745_v53 = vpop.f32.mrb[20].mxu1 }
 0x3f5   : > { %2630 = vtanh.f32 %v1745_v53  ;;  %v1747_v42 = vpop.f32.mrb[21].mxu1 }
 0x3f6   : > { %2632 = vtanh.f32 %v1747_v42 }
 0x3ff   : > { %v2631_v55 = vpop.eup %2630 }
 0x400   : > { %v2633_v56 = vpop.eup %2632  ;;  %v1752_v33 = vmul.f32 %v2631_v55, %v2627_v50 }
 0x401   : > { %v1753_v58 = vmul.f32 %v2633_v56, %v2629_v54 }
 0x402   : > { %1754 = vst [vmem:[%s3760_s1] sm:$0xff] %v1752_v33 }
 0x403   : > { %1755 = vst [vmem:[%s3760_s1 + $0x8] sm:$0xff] %v1753_v58 }
 0x404   : > { %2883 = shalt.err (!%p2880_p12)
}
 0x405   : > { %s2884_s19 = scalar_lea.hbm %s3789_s28, 1024  ;;  %s2888_s18 = scalar_lea.hbm %s3926_s24, 2048 }
 0x406   : > { %p2885_p4 = scmp.ne.s32.totalorder %s3789_s28, %s2884_s19  ;;  %p2889_p0 = scmp.lt.u32.totalorder %s3789_s28, %s3926_s24 }
 0x407   : > { %p2890_p5 = scmp.lt.u32.totalorder %s2888_s18, %s2884_s19  ;;  %p2892_p2 = scmp.lt.u32.totalorder %s2884_s19, %s3789_s28 }
 0x408   : > { %p2886_p6 = pnand %p2885_p4, %p3927_p13 }
 0x409   : > { %p2891_p11 = por %p2890_p5, %p2889_p0 }
 0x40a   : > { %p2887_p10 = pneg %p2886_p6 }
 0x40b   : > { %p2893_p1 = por %p2892_p2, %p2891_p11 }
 0x40d   : > { %p2894_p9 = pnand %p2893_p1, %p2887_p10 }
 0x40f   : > { %2897 = shalt.err (!%p2894_p9)
}
 0x410   : > { %s2981_s11 = smov 256  }
 0x411   : > { %2276 = dma.vmem_to_hbm [thread:$0]  (%p3927_p13), %s3791_s25, 1024, %s3789_s28, %s1763_s30, %s2981_s11, %s2981_s11, %s2971_s22  }
 0x412 PF: > { %s3928_s3 = sld [smem:[#allocation25_spill]]  ;;  %s3929_s23 = sld [smem:[#allocation30_spill]] }
 0x413   : > { %s3930_s13 = sld [smem:[#allocation26_spill]] }
 0x418   : > { %s1791_s29 = sand.u32 1, %s3928_s3   ;;  %p3931_p7 = scmp.ne.s32.totalorder %s3929_s23, 0 }
 0x419   : > { %p3932_p8 = scmp.ge.s32.totalorder %s3930_s13, 2  ;;  %s1792_s6 = scalar_lea.sflag [#allocation5], %s1791_s29 }
 0x41b   : > { %p2305_p3 = pnand %p3932_p8, %p3931_p7 }
 0x41d   : > { %2939 = dma.done.wait (!%p2305_p3), %s1792_s6, 1024  }
 0x41e   : > { %2941 = vsyncadd (!%p2305_p3), %s1792_s6, 4294966272  ;;  %s3933_s16 = sld [smem:[#allocation27_spill]]  ;;  %s3934_s17 = sld [smem:[#allocation28_spill]] }
 0x41f   : > { %s3935_s13 = smov %s2948_s14  ;;  %s3936_s14 = smov %s2952_s15 }
 0x424   : > { %p33_p12 = scmp.ge.s32.totalorder %s3933_s16, 4   ;;  %s3937_s15 = smov %s3934_s17 }
 0x426   :  { %35 = sbr.rel (!%p33_p12) target bundleno = 18 (0x12), region = 174 }
 0x42d   :  { %1797 = vsyncpa [#allocation4], 1 }
 0x42e   :  { %1799 = vsyncpa [#allocation4 + $0x1], 1 }
 0x42f   :  { %1800 = vsyncpa [#allocation7], 1 }
 0x430   :  { %1802 = vsyncpa [#allocation7 + $0x1], 1 }
 0x431   :  { %1803 = vsyncpa [#allocation10], 1 }
 0x432   :  { %1805 = vsyncpa [#allocation10 + $0x1], 1 }
 0x433   :  { %1806 = vsyncpa [#allocation13], 1 }
 0x434   :  { %1808 = vsyncpa [#allocation13 + $0x1], 1 }
 0x435   :  { %1809 = vsyncpa [#allocation16], 1 }
 0x436   :  { %1810 = vsyncpa [#allocation5], 1 }
 0x437   :  { %1812 = vsyncpa [#allocation5 + $0x1], 1 }

</bundles_post_ra>
